<compile_context>
chip_gen: v7x
topology: tpu7x:2x2x1
jax: 0.10.0
libtpu: 0.0.40
codegen_flags: <defaults>
</compile_context>

<pallas_src>
import functools

import jax
import jax.numpy as jnp
from jax.experimental import pallas as pl
from jax.experimental.pallas import tpu as pltpu

CHANNELS = 1
IMG_SIZE = 28
IMG_SHAPE = (CHANNELS, IMG_SIZE, IMG_SIZE)
IMG_PIX = CHANNELS * IMG_SIZE * IMG_SIZE  # 784
LATENT_DIM = 100

# Lane-aligned padded dims.
LATENT_PAD = 128  # 100 -> 128; extra z cols / w1 rows are zero => identical result
OUT_PAD = 896     # 784 -> 896 = 7*128; extra w4/b4 cols are zero, sliced off outside

LEAKY_SLOPE = 0.2
BN_EPS = 1e-5

# Whole-batch fused path: ~1.3 MB bf16 weights + ~12 KB/row of live activations.
# 1024 rows stays far inside the 48 MiB scoped-VMEM limit (v7x-safe: 64 MiB phys).
SMALL_BATCH_MAX_ROWS = 1024
VMEM_LIMIT_FUSED = 48 * 1024 * 1024
# Batch-tiled path: resident weights (<1 MB) + double-buffered 256-row tiles.
TILE_M = 256
VMEM_LIMIT_TILED = 32 * 1024 * 1024


def _leaky_relu(x):
    return jnp.where(x > 0, x, LEAKY_SLOPE * x)


def _dot_bf16(x, w_ref):
    """MXU matmul with bf16 operands and f32 accumulation (no bias)."""
    return jnp.dot(x.astype(jnp.bfloat16), w_ref[...],
                   preferred_element_type=jnp.float32)


# ----------------------------------------------------------------------------
# Small-batch path: whole batch in one fused kernel (exact single-pass BN).
# ----------------------------------------------------------------------------
def generator_fused_kernel(
    z_ref,
    w1_ref, b1_ref,
    w2_ref, g2_ref, be2_ref,
    w3_ref, g3_ref, be3_ref,
    w4_ref, b4_ref,
    out_ref,
    *, n_valid,
):
    b_pad = z_ref.shape[0]
    inv_n = jnp.float32(1.0 / n_valid)

    # Row-validity mask so BatchNorm stats only see the real batch rows.
    # Static no-op when the batch needed no padding.
    if b_pad == n_valid:
        row_mask = None
    else:
        rows = jax.lax.broadcasted_iota(jnp.int32, (b_pad, 1), 0)
        row_mask = (rows < n_valid).astype(jnp.float32)

    def bn_train(x, gamma, beta):
        # Single-pass batch statistics (sum + sum-of-squares), affine folded
        # into one scale/shift per column.
        xm = x if row_mask is None else x * row_mask
        s = jnp.sum(xm, axis=0, keepdims=True)
        ss = jnp.sum(xm * xm, axis=0, keepdims=True)
        mean = s * inv_n
        var = jnp.maximum(ss * inv_n - mean * mean, 0.0)
        scale = jax.lax.rsqrt(var + BN_EPS) * gamma
        shift = beta - mean * scale
        return x * scale + shift

    x = z_ref[...]

    # Linear(128 -> 128) + LeakyReLU   (latent zero-padded 100 -> 128)
    h = _leaky_relu(_dot_bf16(x, w1_ref) + b1_ref[...])

    # Linear(128 -> 256, bias dropped: cancels under BN) + BN(train) + LeakyReLU
    h = _leaky_relu(bn_train(_dot_bf16(h, w2_ref), g2_ref[...], be2_ref[...]))

    # Linear(256 -> 512, bias dropped: cancels under BN) + BN(train) + LeakyReLU
    h = _leaky_relu(bn_train(_dot_bf16(h, w3_ref), g3_ref[...], be3_ref[...]))

    # Linear(512 -> 896) + Tanh   (output zero-padded 784 -> 896), bf16 store.
    out_ref[...] = jnp.tanh(_dot_bf16(h, w4_ref) + b4_ref[...]).astype(jnp.bfloat16)


def _generator_forward_fused(z, kp):
    B = z.shape[0]
    b_pad = max(16, ((B + 15) // 16) * 16)  # 16-row alignment (bf16 sublane pack)

    z_pad = jnp.zeros((b_pad, LATENT_PAD), jnp.float32)
    z_pad = z_pad.at[:B, :LATENT_DIM].set(z.astype(jnp.float32))

    args = (
        z_pad,
        kp["w1"], kp["b1"],
        kp["w2"], kp["g2"], kp["be2"],
        kp["w3"], kp["g3"], kp["be3"],
        kp["w4"], kp["b4"],
    )
    vmem = pl.BlockSpec(memory_space=pltpu.MemorySpace.VMEM)
    flat = pl.pallas_call(
        functools.partial(generator_fused_kernel, n_valid=B),
        out_shape=jax.ShapeDtypeStruct((b_pad, OUT_PAD), jnp.bfloat16),
        in_specs=[vmem] * len(args),
        out_specs=vmem,
        compiler_params=pltpu.CompilerParams(vmem_limit_bytes=VMEM_LIMIT_FUSED),
    )(*args)

    return flat[:B, :IMG_PIX].astype(jnp.float32).reshape(B, *IMG_SHAPE)


# ----------------------------------------------------------------------------
# Large-batch path: batch-tiled grid, two-pass BatchNorm across the grid.
# ----------------------------------------------------------------------------
def _stage1_kernel(z_ref, w1_ref, b1_ref, w2_ref,
                   a2_ref, s2_ref, ss2_ref, *, n_valid):
    i = pl.program_id(0)
    tile_m = z_ref.shape[0]

    h1 = _leaky_relu(_dot_bf16(z_ref[...], w1_ref) + b1_ref[...])
    a2 = _dot_bf16(h1, w2_ref)  # bias dropped: cancels under train-mode BN

    rows = i * tile_m + jax.lax.broadcasted_iota(jnp.int32, (tile_m, 1), 0)
    mask = (rows < n_valid).astype(jnp.float32)
    a2m = a2 * mask

    @pl.when(i == 0)
    def _():
        s2_ref[...] = jnp.zeros_like(s2_ref)
        ss2_ref[...] = jnp.zeros_like(ss2_ref)

    s2_ref[...] += jnp.sum(a2m, axis=0, keepdims=True)
    ss2_ref[...] += jnp.sum(a2m * a2m, axis=0, keepdims=True)
    a2_ref[...] = a2.astype(jnp.bfloat16)


def _stage2_kernel(a2_ref, sc2_ref, sh2_ref, w3_ref,
                   a3_ref, s3_ref, ss3_ref, *, n_valid):
    i = pl.program_id(0)
    tile_m = a2_ref.shape[0]

    h2 = _leaky_relu(a2_ref[...].astype(jnp.float32) * sc2_ref[...] + sh2_ref[...])
    a3 = _dot_bf16(h2, w3_ref)  # bias dropped: cancels under train-mode BN

    rows = i * tile_m + jax.lax.broadcasted_iota(jnp.int32, (tile_m, 1), 0)
    mask = (rows < n_valid).astype(jnp.float32)
    a3m = a3 * mask

    @pl.when(i == 0)
    def _():
        s3_ref[...] = jnp.zeros_like(s3_ref)
        ss3_ref[...] = jnp.zeros_like(ss3_ref)

    s3_ref[...] += jnp.sum(a3m, axis=0, keepdims=True)
    ss3_ref[...] += jnp.sum(a3m * a3m, axis=0, keepdims=True)
    a3_ref[...] = a3.astype(jnp.bfloat16)


def _stage3_kernel(a3_ref, sc3_ref, sh3_ref, w4_ref, b4_ref, out_ref):
    h3 = _leaky_relu(a3_ref[...].astype(jnp.float32) * sc3_ref[...] + sh3_ref[...])
    out_ref[...] = jnp.tanh(_dot_bf16(h3, w4_ref) + b4_ref[...]).astype(jnp.bfloat16)


def _bn_scale_shift(s, ss, gamma, beta, n_valid):
    """Fold exact batch statistics + affine into a (1, N) scale/shift."""
    inv_n = 1.0 / n_valid
    mean = s * inv_n
    var = jnp.maximum(ss * inv_n - mean * mean, 0.0)
    scale = jax.lax.rsqrt(var + BN_EPS) * gamma
    shift = beta - mean * scale
    return scale, shift


def _generator_forward_tiled(z, kp):
    B = z.shape[0]
    b_pad = ((B + TILE_M - 1) // TILE_M) * TILE_M
    nt = b_pad // TILE_M

    z_pad = jnp.zeros((b_pad, LATENT_PAD), jnp.float32)
    z_pad = z_pad.at[:B, :LATENT_DIM].set(z.astype(jnp.float32))

    const = lambda i: (0, 0)
    cp_acc = pltpu.CompilerParams(dimension_semantics=("arbitrary",),
                                  vmem_limit_bytes=VMEM_LIMIT_TILED)
    cp_par = pltpu.CompilerParams(dimension_semantics=("parallel",),
                                  vmem_limit_bytes=VMEM_LIMIT_TILED)

    # Pass 1: layer1 + layer2 matmul; accumulate layer-2 BN stats across tiles.
    a2, s2, ss2 = pl.pallas_call(
        functools.partial(_stage1_kernel, n_valid=B),
        grid=(nt,),
        in_specs=[pl.BlockSpec((TILE_M, LATENT_PAD), lambda i: (i, 0)),
                  pl.BlockSpec((LATENT_PAD, 128), const),
                  pl.BlockSpec((1, 128), const),
                  pl.BlockSpec((128, 256), const)],
        out_specs=[pl.BlockSpec((TILE_M, 256), lambda i: (i, 0)),
                   pl.BlockSpec((1, 256), const),
                   pl.BlockSpec((1, 256), const)],
        out_shape=(jax.ShapeDtypeStruct((b_pad, 256), jnp.bfloat16),
                   jax.ShapeDtypeStruct((1, 256), jnp.float32),
                   jax.ShapeDtypeStruct((1, 256), jnp.float32)),
        compiler_params=cp_acc,
    )(z_pad, kp["w1"], kp["b1"], kp["w2"])

    sc2, sh2 = _bn_scale_shift(s2, ss2, kp["g2"], kp["be2"], B)

    # Pass 2: normalize layer2 + layer3 matmul; accumulate layer-3 BN stats.
    a3, s3, ss3 = pl.pallas_call(
        functools.partial(_stage2_kernel, n_valid=B),
        grid=(nt,),
        in_specs=[pl.BlockSpec((TILE_M, 256), lambda i: (i, 0)),
                  pl.BlockSpec((1, 256), const),
                  pl.BlockSpec((1, 256), const),
                  pl.BlockSpec((256, 512), const)],
        out_specs=[pl.BlockSpec((TILE_M, 512), lambda i: (i, 0)),
                   pl.BlockSpec((1, 512), const),
                   pl.BlockSpec((1, 512), const)],
        out_shape=(jax.ShapeDtypeStruct((b_pad, 512), jnp.bfloat16),
                   jax.ShapeDtypeStruct((1, 512), jnp.float32),
                   jax.ShapeDtypeStruct((1, 512), jnp.float32)),
        compiler_params=cp_acc,
    )(a2, sc2, sh2, kp["w3"])

    sc3, sh3 = _bn_scale_shift(s3, ss3, kp["g3"], kp["be3"], B)

    # Pass 3: normalize layer3 + layer4 + tanh (no BN -> batch axis parallel).
    flat = pl.pallas_call(
        _stage3_kernel,
        grid=(nt,),
        in_specs=[pl.BlockSpec((TILE_M, 512), lambda i: (i, 0)),
                  pl.BlockSpec((1, 512), const),
                  pl.BlockSpec((1, 512), const),
                  pl.BlockSpec((512, OUT_PAD), const),
                  pl.BlockSpec((1, OUT_PAD), const)],
        out_specs=pl.BlockSpec((TILE_M, OUT_PAD), lambda i: (i, 0)),
        out_shape=jax.ShapeDtypeStruct((b_pad, OUT_PAD), jnp.bfloat16),
        compiler_params=cp_par,
    )(a3, sc3, sh3, kp["w4"], kp["b4"])

    return flat[:B, :IMG_PIX].astype(jnp.float32).reshape(B, *IMG_SHAPE)


# ----------------------------------------------------------------------------
# Public wrapper + parameter prep
# ----------------------------------------------------------------------------
def generator_forward(z, kparams, force_tiled=False):
    """z: (B, LATENT_DIM) float32 -> image (B, 1, 28, 28) float32."""
    B = z.shape[0]
    if force_tiled or B > SMALL_BATCH_MAX_ROWS:
        return _generator_forward_tiled(z, kparams)
    return _generator_forward_fused(z, kparams)


def prepare_params(params):
    """Pad to lane-aligned shapes, cast weights to bf16 (done once).

    b2/b3 are intentionally omitted: pre-BN biases cancel exactly under
    train-mode BatchNorm, so the kernels never use them.
    """

    def pad_to(a, shape):
        out = jnp.zeros(shape, a.dtype)
        return out.at[tuple(slice(0, s) for s in a.shape)].set(a)

    return {
        "w1": pad_to(params["w1"], (LATENT_PAD, 128)).astype(jnp.bfloat16),
        "b1": params["b1"].astype(jnp.float32),
        "w2": params["w2"].astype(jnp.bfloat16),
        "g2": params["g2"].astype(jnp.float32),
        "be2": params["be2"].astype(jnp.float32),
        "w3": params["w3"].astype(jnp.bfloat16),
        "g3": params["g3"].astype(jnp.float32),
        "be3": params["be3"].astype(jnp.float32),
        "w4": pad_to(params["w4"], (512, OUT_PAD)).astype(jnp.bfloat16),
        "b4": pad_to(params["b4"], (1, OUT_PAD)).astype(jnp.float32),
    }


def generator_reference(z, params):
    """Pure-JAX f32 reference of the PyTorch forward (training-mode BN)."""

    def bn(x, g, b):
        mean = jnp.mean(x, axis=0, keepdims=True)
        var = jnp.mean((x - mean) ** 2, axis=0, keepdims=True)
        return (x - mean) * jax.lax.rsqrt(var + BN_EPS) * g + b

    h = _leaky_relu(z @ params["w1"] + params["b1"])
    h = _leaky_relu(bn(h @ params["w2"] + params["b2"], params["g2"], params["be2"]))
    h = _leaky_relu(bn(h @ params["w3"] + params["b3"], params["g3"], params["be3"]))
    h = jnp.tanh(h @ params["w4"] + params["b4"])
    return h.reshape(z.shape[0], *IMG_SHAPE)


def init_params(key):
    """Deterministic synthetic parameters (PyTorch-Linear-style uniform init), f32."""
    dims = [(LATENT_DIM, 128), (128, 256), (256, 512), (512, IMG_PIX)]
    params = {}
    keys = jax.random.split(key, 2 * len(dims))
    for i, (fan_in, fan_out) in enumerate(dims):
        bound = 1.0 / jnp.sqrt(jnp.float32(fan_in))
        params[f"w{i + 1}"] = jax.random.uniform(
            keys[2 * i], (fan_in, fan_out), minval=-bound, maxval=bound,
            dtype=jnp.float32)
        params[f"b{i + 1}"] = jax.random.uniform(
            keys[2 * i + 1], (1, fan_out), minval=-bound, maxval=bound,
            dtype=jnp.float32)
    # BatchNorm1d default affine params: gamma=1, beta=0
    params["g2"] = jnp.ones((1, 256), jnp.float32)
    params["be2"] = jnp.zeros((1, 256), jnp.float32)
    params["g3"] = jnp.ones((1, 512), jnp.float32)
    params["be3"] = jnp.zeros((1, 512), jnp.float32)
    return params


if __name__ == "__main__":
    key = jax.random.PRNGKey(0)
    pkey, zkey1, zkey2 = jax.random.split(key, 3)
    params = init_params(pkey)
    kparams = prepare_params(params)

    # --- Path 1: small batch, whole-batch fused kernel. B deliberately not a
    # multiple of 16 to exercise batch-padding + masked BN statistics.
    B1 = 12
    z1 = jax.random.normal(zkey1, (B1, LATENT_DIM), dtype=jnp.float32)
    img1 = jax.block_until_ready(jax.jit(generator_forward)(z1, kparams))
    assert img1.shape == (B1, CHANNELS, IMG_SIZE, IMG_SIZE), img1.shape
    assert img1.dtype == jnp.float32
    assert bool(jnp.all(jnp.isfinite(img1)))
    assert bool(jnp.all(jnp.abs(img1) <= 1.0 + 1e-6))
    ref1 = generator_reference(z1, params)
    err1 = float(jnp.max(jnp.abs(img1 - ref1)))
    # Loose tolerance: bf16 MXU operands + bf16 output store (~4e-3 extra).
    assert err1 < 1e-1, f"fused path: max abs err vs f32 reference = {err1}"

    # --- Path 2: batch-tiled, two-pass-BN path (forced at a modest B so the
    # grid has >1 tile and a ragged final tile).
    B2 = 300
    z2 = jax.random.normal(zkey2, (B2, LATENT_DIM), dtype=jnp.float32)
    fwd_tiled = jax.jit(functools.partial(generator_forward, force_tiled=True))
    img2 = jax.block_until_ready(fwd_tiled(z2, kparams))
    assert img2.shape == (B2, CHANNELS, IMG_SIZE, IMG_SIZE), img2.shape
    assert bool(jnp.all(jnp.isfinite(img2)))
    assert bool(jnp.all(jnp.abs(img2) <= 1.0 + 1e-6))
    ref2 = generator_reference(z2, params)
    err2 = float(jnp.max(jnp.abs(img2 - ref2)))
    assert err2 < 1e-1, f"tiled path: max abs err vs f32 reference = {err2}"

    print("KERNEL_OK")
</pallas_src>

<mosaic_0001>
module attributes {stable_mosaic.version = 11 : i64} {
  func.func @generator_fused_kernel(%arg0: memref<16x128xf32, #tpu.memory_space<vmem>>, %arg1: memref<128x128xbf16, #tpu.memory_space<vmem>>, %arg2: memref<1x128xf32, #tpu.memory_space<vmem>>, %arg3: memref<128x256xbf16, #tpu.memory_space<vmem>>, %arg4: memref<1x256xf32, #tpu.memory_space<vmem>>, %arg5: memref<1x256xf32, #tpu.memory_space<vmem>>, %arg6: memref<256x512xbf16, #tpu.memory_space<vmem>>, %arg7: memref<1x512xf32, #tpu.memory_space<vmem>>, %arg8: memref<1x512xf32, #tpu.memory_space<vmem>>, %arg9: memref<512x896xbf16, #tpu.memory_space<vmem>>, %arg10: memref<1x896xf32, #tpu.memory_space<vmem>>, %arg11: memref<16x896xbf16, #tpu.memory_space<vmem>>) attributes {dimension_semantics = [], scalar_prefetch = 0 : i64, scratch_operands = 0 : i64, tpu.core_type = #tpu.core_type<tc>} {
    %0 = tpu.iota {dimensions = array<i32: 0>} : vector<16x1xi32>
    %c12_i32 = arith.constant 12 : i32
    %1 = vector.broadcast %c12_i32 : i32 to vector<16x1xi32>
    %2 = arith.cmpi slt, %0, %1 : vector<16x1xi32>
    %3 = arith.extui %2 : vector<16x1xi1> to vector<16x1xi32>
    %4 = arith.sitofp %3 : vector<16x1xi32> to vector<16x1xf32>
    %c0 = arith.constant 0 : index
    %c0_0 = arith.constant 0 : index
    %5 = vector.load %arg0[%c0, %c0_0] : memref<16x128xf32, #tpu.memory_space<vmem>>, vector<16x128xf32>
    %6 = arith.truncf %5 : vector<16x128xf32> to vector<16x128xbf16>
    %c0_1 = arith.constant 0 : index
    %c0_2 = arith.constant 0 : index
    %7 = vector.load %arg1[%c0_1, %c0_2] : memref<128x128xbf16, #tpu.memory_space<vmem>>, vector<128x128xbf16>
    %cst = arith.constant dense<0.000000e+00> : vector<16x128xf32>
    %8 = tpu.matmul %6, %7, %cst {dimension_numbers = #tpu.dot_dimension_numbers<[1], [0], [0], [1], [0, 0, 1, 1], [], []>} : vector<16x128xbf16>, vector<128x128xbf16>, vector<16x128xf32> -> vector<16x128xf32>
    %c0_3 = arith.constant 0 : index
    %c0_4 = arith.constant 0 : index
    %9 = vector.load %arg2[%c0_3, %c0_4] : memref<1x128xf32, #tpu.memory_space<vmem>>, vector<1x128xf32>
    %10 = vector.broadcast %9 : vector<1x128xf32> to vector<16x128xf32>
    %11 = arith.addf %8, %10 : vector<16x128xf32>
    %cst_5 = arith.constant 0.000000e+00 : f32
    %12 = vector.broadcast %cst_5 : f32 to vector<16x128xf32>
    %13 = arith.cmpf ogt, %11, %12 : vector<16x128xf32>
    %cst_6 = arith.constant 2.000000e-01 : f32
    %14 = vector.broadcast %cst_6 : f32 to vector<16x128xf32>
    %15 = arith.mulf %14, %11 : vector<16x128xf32>
    %16 = arith.select %13, %11, %15 : vector<16x128xi1>, vector<16x128xf32>
    %17 = arith.truncf %16 : vector<16x128xf32> to vector<16x128xbf16>
    %c0_7 = arith.constant 0 : index
    %c0_8 = arith.constant 0 : index
    %18 = vector.load %arg3[%c0_7, %c0_8] : memref<128x256xbf16, #tpu.memory_space<vmem>>, vector<128x256xbf16>
    %cst_9 = arith.constant dense<0.000000e+00> : vector<16x256xf32>
    %19 = tpu.matmul %17, %18, %cst_9 {dimension_numbers = #tpu.dot_dimension_numbers<[1], [0], [0], [1], [0, 0, 1, 1], [], []>} : vector<16x128xbf16>, vector<128x256xbf16>, vector<16x256xf32> -> vector<16x256xf32>
    %c0_10 = arith.constant 0 : index
    %c0_11 = arith.constant 0 : index
    %20 = vector.load %arg4[%c0_10, %c0_11] : memref<1x256xf32, #tpu.memory_space<vmem>>, vector<1x256xf32>
    %c0_12 = arith.constant 0 : index
    %c0_13 = arith.constant 0 : index
    %21 = vector.load %arg5[%c0_12, %c0_13] : memref<1x256xf32, #tpu.memory_space<vmem>>, vector<1x256xf32>
    %22 = vector.broadcast %4 : vector<16x1xf32> to vector<16x256xf32>
    %23 = arith.mulf %19, %22 : vector<16x256xf32>
    %cst_14 = arith.constant dense<0.000000e+00> : vector<256xf32>
    %24 = vector.multi_reduction <add>, %23, %cst_14 [0] : vector<16x256xf32> to vector<256xf32>
    %25 = vector.shape_cast %24 : vector<256xf32> to vector<1x256xf32>
    %26 = arith.mulf %23, %23 : vector<16x256xf32>
    %cst_15 = arith.constant dense<0.000000e+00> : vector<256xf32>
    %27 = vector.multi_reduction <add>, %26, %cst_15 [0] : vector<16x256xf32> to vector<256xf32>
    %28 = vector.shape_cast %27 : vector<256xf32> to vector<1x256xf32>
    %cst_16 = arith.constant 0.0833333358 : f32
    %29 = vector.broadcast %cst_16 : f32 to vector<1x256xf32>
    %30 = arith.mulf %25, %29 : vector<1x256xf32>
    %cst_17 = arith.constant 0.0833333358 : f32
    %31 = vector.broadcast %cst_17 : f32 to vector<1x256xf32>
    %32 = arith.mulf %28, %31 : vector<1x256xf32>
    %33 = arith.mulf %30, %30 : vector<1x256xf32>
    %34 = arith.subf %32, %33 : vector<1x256xf32>
    %cst_18 = arith.constant 0.000000e+00 : f32
    %35 = vector.broadcast %cst_18 : f32 to vector<1x256xf32>
    %36 = arith.maximumf %34, %35 : vector<1x256xf32>
    %cst_19 = arith.constant 9.99999974E-6 : f32
    %37 = vector.broadcast %cst_19 : f32 to vector<1x256xf32>
    %38 = arith.addf %36, %37 : vector<1x256xf32>
    %39 = math.rsqrt %38 : vector<1x256xf32>
    %40 = arith.mulf %39, %20 : vector<1x256xf32>
    %41 = arith.mulf %30, %40 : vector<1x256xf32>
    %42 = arith.subf %21, %41 : vector<1x256xf32>
    %43 = vector.broadcast %40 : vector<1x256xf32> to vector<16x256xf32>
    %44 = arith.mulf %19, %43 : vector<16x256xf32>
    %45 = vector.broadcast %42 : vector<1x256xf32> to vector<16x256xf32>
    %46 = arith.addf %44, %45 : vector<16x256xf32>
    %cst_20 = arith.constant 0.000000e+00 : f32
    %47 = vector.broadcast %cst_20 : f32 to vector<16x256xf32>
    %48 = arith.cmpf ogt, %46, %47 : vector<16x256xf32>
    %cst_21 = arith.constant 2.000000e-01 : f32
    %49 = vector.broadcast %cst_21 : f32 to vector<16x256xf32>
    %50 = arith.mulf %49, %46 : vector<16x256xf32>
    %51 = arith.select %48, %46, %50 : vector<16x256xi1>, vector<16x256xf32>
    %52 = arith.truncf %51 : vector<16x256xf32> to vector<16x256xbf16>
    %c0_22 = arith.constant 0 : index
    %c0_23 = arith.constant 0 : index
    %53 = vector.load %arg6[%c0_22, %c0_23] : memref<256x512xbf16, #tpu.memory_space<vmem>>, vector<256x512xbf16>
    %cst_24 = arith.constant dense<0.000000e+00> : vector<16x512xf32>
    %54 = tpu.matmul %52, %53, %cst_24 {dimension_numbers = #tpu.dot_dimension_numbers<[1], [0], [0], [1], [0, 0, 1, 1], [], []>} : vector<16x256xbf16>, vector<256x512xbf16>, vector<16x512xf32> -> vector<16x512xf32>
    %c0_25 = arith.constant 0 : index
    %c0_26 = arith.constant 0 : index
    %55 = vector.load %arg7[%c0_25, %c0_26] : memref<1x512xf32, #tpu.memory_space<vmem>>, vector<1x512xf32>
    %c0_27 = arith.constant 0 : index
    %c0_28 = arith.constant 0 : index
    %56 = vector.load %arg8[%c0_27, %c0_28] : memref<1x512xf32, #tpu.memory_space<vmem>>, vector<1x512xf32>
    %57 = vector.broadcast %4 : vector<16x1xf32> to vector<16x512xf32>
    %58 = arith.mulf %54, %57 : vector<16x512xf32>
    %cst_29 = arith.constant dense<0.000000e+00> : vector<512xf32>
    %59 = vector.multi_reduction <add>, %58, %cst_29 [0] : vector<16x512xf32> to vector<512xf32>
    %60 = vector.shape_cast %59 : vector<512xf32> to vector<1x512xf32>
    %61 = arith.mulf %58, %58 : vector<16x512xf32>
    %cst_30 = arith.constant dense<0.000000e+00> : vector<512xf32>
    %62 = vector.multi_reduction <add>, %61, %cst_30 [0] : vector<16x512xf32> to vector<512xf32>
    %63 = vector.shape_cast %62 : vector<512xf32> to vector<1x512xf32>
    %cst_31 = arith.constant 0.0833333358 : f32
    %64 = vector.broadcast %cst_31 : f32 to vector<1x512xf32>
    %65 = arith.mulf %60, %64 : vector<1x512xf32>
    %cst_32 = arith.constant 0.0833333358 : f32
    %66 = vector.broadcast %cst_32 : f32 to vector<1x512xf32>
    %67 = arith.mulf %63, %66 : vector<1x512xf32>
    %68 = arith.mulf %65, %65 : vector<1x512xf32>
    %69 = arith.subf %67, %68 : vector<1x512xf32>
    %cst_33 = arith.constant 0.000000e+00 : f32
    %70 = vector.broadcast %cst_33 : f32 to vector<1x512xf32>
    %71 = arith.maximumf %69, %70 : vector<1x512xf32>
    %cst_34 = arith.constant 9.99999974E-6 : f32
    %72 = vector.broadcast %cst_34 : f32 to vector<1x512xf32>
    %73 = arith.addf %71, %72 : vector<1x512xf32>
    %74 = math.rsqrt %73 : vector<1x512xf32>
    %75 = arith.mulf %74, %55 : vector<1x512xf32>
    %76 = arith.mulf %65, %75 : vector<1x512xf32>
    %77 = arith.subf %56, %76 : vector<1x512xf32>
    %78 = vector.broadcast %75 : vector<1x512xf32> to vector<16x512xf32>
    %79 = arith.mulf %54, %78 : vector<16x512xf32>
    %80 = vector.broadcast %77 : vector<1x512xf32> to vector<16x512xf32>
    %81 = arith.addf %79, %80 : vector<16x512xf32>
    %cst_35 = arith.constant 0.000000e+00 : f32
    %82 = vector.broadcast %cst_35 : f32 to vector<16x512xf32>
    %83 = arith.cmpf ogt, %81, %82 : vector<16x512xf32>
    %cst_36 = arith.constant 2.000000e-01 : f32
    %84 = vector.broadcast %cst_36 : f32 to vector<16x512xf32>
    %85 = arith.mulf %84, %81 : vector<16x512xf32>
    %86 = arith.select %83, %81, %85 : vector<16x512xi1>, vector<16x512xf32>
    %87 = arith.truncf %86 : vector<16x512xf32> to vector<16x512xbf16>
    %c0_37 = arith.constant 0 : index
    %c0_38 = arith.constant 0 : index
    %88 = vector.load %arg9[%c0_37, %c0_38] : memref<512x896xbf16, #tpu.memory_space<vmem>>, vector<512x896xbf16>
    %cst_39 = arith.constant dense<0.000000e+00> : vector<16x896xf32>
    %89 = tpu.matmul %87, %88, %cst_39 {dimension_numbers = #tpu.dot_dimension_numbers<[1], [0], [0], [1], [0, 0, 1, 1], [], []>} : vector<16x512xbf16>, vector<512x896xbf16>, vector<16x896xf32> -> vector<16x896xf32>
    %c0_40 = arith.constant 0 : index
    %c0_41 = arith.constant 0 : index
    %90 = vector.load %arg10[%c0_40, %c0_41] : memref<1x896xf32, #tpu.memory_space<vmem>>, vector<1x896xf32>
    %91 = vector.broadcast %90 : vector<1x896xf32> to vector<16x896xf32>
    %92 = arith.addf %89, %91 : vector<16x896xf32>
    %93 = math.tanh %92 : vector<16x896xf32>
    %94 = arith.truncf %93 : vector<16x896xf32> to vector<16x896xbf16>
    %c0_42 = arith.constant 0 : index
    %c0_43 = arith.constant 0 : index
    %95 = vector.load %arg11[%c0_42, %c0_43] : memref<16x896xbf16, #tpu.memory_space<vmem>>, vector<16x896xbf16>
    tpu.vector_store %arg11[%c0_42, %c0_43], %94 {strides = array<i32>} : memref<16x896xbf16, #tpu.memory_space<vmem>>, vector<16x896xbf16>,
    return
  }
}

</mosaic_0001>

<bundles_post_ra>
// kernel: generator_forward.1
= control target key start
LH: loop header
LB: loop body
LE: loop exit
PB: predicated region body
PF: predicated region fallthrough
CT: control target
= control target key end

     0   :  { %16 = vsyncpa [#allocation3], 0  ;;  %s4418_s0 = inlined_call_operand.vmem [shape: f32[16,128], index: 0, kind: input, shape index: {}]   ;;  %s4419_s1 = inlined_call_operand.hbm [shape: bf16[128,128], index: 1, kind: input, shape index: {}]   ;;  %s4420_s2 = inlined_call_operand.vmem [shape: f32[1,128], index: 2, kind: input, shape index: {}]   ;;  %s4421_s3 = inlined_call_operand.hbm [shape: bf16[128,256], index: 3, kind: input, shape index: {}]   ;;  %s4422_s4 = inlined_call_operand.vmem [shape: f32[1,256], index: 4, kind: input, shape index: {}]   ;;  %s4423_s5 = inlined_call_operand.vmem [shape: f32[1,256], index: 5, kind: input, shape index: {}]   ;;  %s4424_s6 = inlined_call_operand.hbm [shape: bf16[256,512], index: 6, kind: input, shape index: {}]   ;;  %s4425_s7 = inlined_call_operand.vmem [shape: f32[1,512], index: 7, kind: input, shape index: {}]   ;;  %s4426_s8 = inlined_call_operand.vmem [shape: f32[1,512], index: 8, kind: input, shape index: {}]   ;;  %s4427_s9 = inlined_call_operand.hbm [shape: bf16[512,896], index: 9, kind: input, shape index: {}]   ;;  %s4428_s10 = inlined_call_operand.vmem [shape: f32[1,896], index: 10, kind: input, shape index: {}]   ;;  %s4429_s11 = inlined_call_operand.vmem [shape: bf16[16,896], index: 11, kind: output, shape index: {}]  }
   0x1   :  { %17 = vsyncpa [#allocation5], 0 }
   0x2   :  { %18 = vsyncpa [#allocation8], 0  ;;  %s4086_s17 = smov [#allocation4]   ;;  %s3992_s21 = scalar_lea.hbm %s4421_s3, 2048 }
   0x3   :  { %s40_s18 = sshll.u32 %s4086_s17, 4  ;;  %p3993_p0 = scmp.ne.s32.totalorder %s4421_s3, %s3992_s21  ;;  %s41_s18 = int_to_ptr.vmem [resolvable:$true] %s40_s18 }
   0x4   :  { %p3996_p1 = scmp.lt.u32.totalorder %s3992_s21, %s4421_s3 }
   0x6   :  { %p3998_p2 = pnand %p3996_p1, %p3993_p0 }
   0x8   :  { %4001 = shalt.err (!%p3998_p2)
}
   0x9   :  { %s4002_s26 = scalar_lea.vmem %s41_s18, 2048  ;;  %p4007_p4 = scmp.lt.s32.totalorder %s41_s18, %s41_s18 }
   0xa   :  { %p4003_p3 = scmp.ne.s32.totalorder %s41_s18, %s4002_s26  ;;  %p4008_p5 = scmp.lt.s32.totalorder %s4002_s26, %s4002_s26 }
   0xc   :  { %p4009_p6 = por %p4008_p5, %p4007_p4 }
   0xe   :  { %p4010_p7 = pnand %p4009_p6, %p4003_p3 }
  0x10   :  { %4013 = shalt.err (!%p4010_p7)
}
  0x11   :  { %s4087_s27 = smov 128   ;;  %s4088_s28 = smov 8  }
  0x12   :  { %46 = dma.hbm_to_vmem [thread:$0]  %s4421_s3, 2048, %s41_s18, [#allocation5], %s4087_s27, %s4087_s27, %s4088_s28  }
  0x13   :  { %s4089_s12 = smov [#allocation2]   ;;  %s4014_s16 = scalar_lea.hbm %s4419_s1, 1024 }
  0x14   :  { %s26_s13 = sshll.u32 %s4089_s12, 4  ;;  %p4015_p8 = scmp.ne.s32.totalorder %s4419_s1, %s4014_s16  ;;  %s27_s13 = int_to_ptr.vmem [resolvable:$true] %s26_s13 }
  0x15   :  { %p4018_p9 = scmp.lt.u32.totalorder %s4014_s16, %s4419_s1 }
  0x17   :  { %p4020_p10 = pnand %p4018_p9, %p4015_p8 }
  0x19   :  { %4023 = shalt.err (!%p4020_p10)
}
  0x1a   :  { %s4024_s22 = scalar_lea.vmem %s27_s13, 1024  ;;  %p4029_p12 = scmp.lt.s32.totalorder %s27_s13, %s27_s13 }
  0x1b   :  { %p4025_p11 = scmp.ne.s32.totalorder %s27_s13, %s4024_s22  ;;  %p4030_p13 = scmp.lt.s32.totalorder %s4024_s22, %s4024_s22 }
  0x1d   :  { %p4031_p0 = por %p4030_p13, %p4029_p12 }
  0x1f   :  { %p4032_p1 = pnand %p4031_p0, %p4025_p11 }
  0x21   :  { %4035 = shalt.err (!%p4032_p1)
}
  0x22   :  { %s4090_s3 = smov 64   ;;  %s4091_s18 = smov 4  }
  0x23   :  { %32 = dma.hbm_to_vmem [thread:$0]  %s4419_s1, 1024, %s27_s13, [#allocation3], %s4090_s3, %s4090_s3, %s4091_s18  }
  0x24   :  { %s4092_s25 = smov [#allocation6]   ;;  %s4036_s29 = scalar_lea.hbm %s4424_s6, 8192 }
  0x25   :  { %s56_s26 = sshll.u32 %s4092_s25, 4  ;;  %p4037_p2 = scmp.ne.s32.totalorder %s4424_s6, %s4036_s29  ;;  %s57_s26 = int_to_ptr.vmem [resolvable:$true] %s56_s26 }
  0x26   :  { %p4040_p3 = scmp.lt.u32.totalorder %s4036_s29, %s4424_s6 }
  0x28   :  { %p4042_p4 = pnand %p4040_p3, %p4037_p2 }
  0x2a   :  { %4045 = shalt.err (!%p4042_p4)
}
  0x2b   :  { %s4046_s16 = scalar_lea.vmem %s57_s26, 8192  ;;  %p4051_p6 = scmp.lt.s32.totalorder %s57_s26, %s57_s26 }
  0x2c   :  { %p4047_p5 = scmp.ne.s32.totalorder %s57_s26, %s4046_s16  ;;  %p4052_p7 = scmp.lt.s32.totalorder %s4046_s16, %s4046_s16 }
  0x2e   :  { %p4053_p8 = por %p4052_p7, %p4051_p6 }
  0x30   :  { %p4054_p9 = pnand %p4053_p8, %p4047_p5 }
  0x32   :  { %4057 = shalt.err (!%p4054_p9)
}
  0x33   :  { %s4093_s1 = smov 256   ;;  %s4094_s13 = smov 16  }
  0x34   :  { %62 = dma.hbm_to_vmem [thread:$0]  %s4424_s6, 8192, %s57_s26, [#allocation5], %s4093_s1, %s4093_s1, %s4094_s13  }
  0x35   :  { %s4095_s20 = smov [#allocation7]   ;;  %s4058_s18 = scalar_lea.hbm %s4427_s9, 28672 }
  0x36   :  { %s72_s21 = sshll.u32 %s4095_s20, 4  ;;  %p4059_p10 = scmp.ne.s32.totalorder %s4427_s9, %s4058_s18  ;;  %s73_s21 = int_to_ptr.vmem [resolvable:$true] %s72_s21 }
  0x37   :  { %p4062_p11 = scmp.lt.u32.totalorder %s4058_s18, %s4427_s9 }
  0x39   :  { %p4064_p12 = pnand %p4062_p11, %p4059_p10 }
  0x3b   :  { %4067 = shalt.err (!%p4064_p12)
}
  0x3c   :  { %s4068_s28 = scalar_lea.vmem %s73_s21, 28672  ;;  %p4073_p0 = scmp.lt.s32.totalorder %s73_s21, %s73_s21 }
  0x3d   :  { %p4069_p13 = scmp.ne.s32.totalorder %s73_s21, %s4068_s28  ;;  %p4074_p1 = scmp.lt.s32.totalorder %s4068_s28, %s4068_s28 }
  0x3f   :  { %p4075_p2 = por %p4074_p1, %p4073_p0 }
  0x41   :  { %p4076_p3 = pnand %p4075_p2, %p4069_p13 }
  0x43   :  { %4079 = shalt.err (!%p4076_p3)
}
  0x44   :  { %s4096_s6 = smov 448   ;;  %s4097_s26 = smov 28  }
  0x45   :  { %78 = dma.hbm_to_vmem [thread:$0]  %s4427_s9, 28672, %s73_s21, [#allocation8], %s4096_s6, %s4096_s6, %s4097_s26  }
  0x46   :  { %4080 = dma.done.wait [#allocation3], 1024  }
  0x47   :  { %4081 = vsyncadd [#allocation3], 4294966272 }
  0x48   :  { %4082 = dma.done.wait [#allocation5], 10240  }
  0x49   :  { %4083 = vsyncadd [#allocation5], 4294957056 }
  0x4a   :  { %4084 = dma.done.wait [#allocation8], 28672  }
  0x4b   :  { %4085 = vsyncadd [#allocation8], 4294938624  ;;  %v4098_v0 = vmov 0.0   ;;  %vm4099_vm0 = vmmov 0   ;;  %v3504_v1 = vld [vmem:[#allocation2] sm:$0xff]   ;;  %v3505_v2 = vld [vmem:[#allocation2 + $0x8] sm:$0xff]  }
  0x4c   :  { %3444 = vmatprep.subr.bf16.mxu1 %v4098_v0  ;;  %3460 = vmatprep.mubr.msk.bf16.mxu1 %vm4099_vm0, %v4098_v0  ;;  %v3506_v3 = vld [vmem:[#allocation2 + $0x10] sm:$0xff]   ;;  %v3507_v4 = vld [vmem:[#allocation2 + $0x18] sm:$0xff]   ;;  %v3508_v5 = vld [vmem:[#allocation2 + $0x20] sm:$0xff]   ;;  %v4100_v28 = vmov 0  }
  0x4d   :  { %3445 = vmatpush3.bf16.msra.mxu1 %v3504_v1  ;;  %v3509_v6 = vld [vmem:[#allocation2 + $0x28] sm:$0xff]   ;;  %v3510_v7 = vld [vmem:[#allocation2 + $0x30] sm:$0xff]   ;;  %v3511_v8 = vld [vmem:[#allocation2 + $0x38] sm:$0xff]  }
  0x4e   :  { %3446 = vmatprep.subr.bf16.mxu1 %v4098_v0  ;;  %v103_v9 = vld [vmem:[%s4418_s0] sm:$0xff]  ;;  %v104_v10 = vld [vmem:[%s4418_s0 + $0x8] sm:$0xff]  ;;  %v3517_v14 = vld [vmem:[#allocation4 + $0x14] ss:$8 sps:$4 sm:$0xff]  }
  0x4f   :  { %v3514_v11 = vld [vmem:[#allocation4 + $0x4] ss:$8 sps:$4 sm:$0xff]   ;;  %v3512_v12 = vld [vmem:[#allocation4] ss:$8 sps:$4 sm:$0xff]   ;;  %v105_v13 = vpack.c.bf16 %v104_v10, %v103_v9  ;;  %v3515_v15 = vld [vmem:[#allocation4 + $0x10] ss:$8 sps:$4 sm:$0xff]  }
  0x50   :  { %v3520_v16 = vld [vmem:[#allocation4 + $0x24] ss:$8 sps:$4 sm:$0xff]   ;;  %v3518_v17 = vld [vmem:[#allocation4 + $0x20] ss:$8 sps:$4 sm:$0xff]   ;;  %v3523_v18 = vld [vmem:[#allocation4 + $0x34] ss:$8 sps:$4 sm:$0xff]  }
  0x51   :  { %3447 = vmatpush3.bf16.msra.mxu1 %v3505_v2  ;;  %v3521_v19 = vld [vmem:[#allocation4 + $0x30] ss:$8 sps:$4 sm:$0xff]   ;;  %v3526_v20 = vld [vmem:[#allocation4 + $0x44] ss:$8 sps:$4 sm:$0xff]   ;;  %v3524_v21 = vld [vmem:[#allocation4 + $0x40] ss:$8 sps:$4 sm:$0xff]  }
  0x52   :  { %3448 = vmatprep.subr.bf16.mxu1 %v4098_v0  ;;  %v3529_v22 = vld [vmem:[#allocation4 + $0x54] ss:$8 sps:$4 sm:$0xff]   ;;  %v3527_v23 = vld [vmem:[#allocation4 + $0x50] ss:$8 sps:$4 sm:$0xff]   ;;  %v3532_v24 = vld [vmem:[#allocation4 + $0x64] ss:$8 sps:$4 sm:$0xff]  }
  0x53   :  { %v3530_v25 = vld [vmem:[#allocation4 + $0x60] ss:$8 sps:$4 sm:$0xff]   ;;  %v3535_v26 = vld [vmem:[#allocation4 + $0x74] ss:$8 sps:$4 sm:$0xff]   ;;  %v3533_v27 = vld [vmem:[#allocation4 + $0x70] ss:$8 sps:$4 sm:$0xff]  }
  0x54   :  { %v3536_v29 = vld [vmem:[#allocation6 + $0x4] ss:$16 sps:$4 sm:$0xff]   ;;  %v3540_v30 = vld [vmem:[#allocation6 + $0xc] ss:$16 sps:$4 sm:$0xff]   ;;  %v3062_v31 = vld [vmem:[%s4420_s2] ss:$0 sm:$0xff] }
  0x55   :  { %3449 = vmatpush3.bf16.msra.mxu1 %v3506_v3  ;;  %875 = vmatprep.subr.bf16.mxu0 %v3536_v29  ;;  %v3538_v42 = vld [vmem:[#allocation6 + $0x8] ss:$16 sps:$4 sm:$0xff]   ;;  %v3541_v44 = vld [vmem:[#allocation6] ss:$16 sps:$4 sm:$0xff]   ;;  %v3542_v45 = vld [vmem:[#allocation6 + $0x24] ss:$16 sps:$4 sm:$0xff]  }
  0x56   :  { %3450 = vmatprep.subr.bf16.mxu1 %v4098_v0  ;;  %876 = vmatpush1.bf16.msra.mxu0 %v3541_v44  ;;  %v3546_v46 = vld [vmem:[#allocation6 + $0x2c] ss:$16 sps:$4 sm:$0xff]   ;;  %v3544_v47 = vld [vmem:[#allocation6 + $0x28] ss:$16 sps:$4 sm:$0xff]   ;;  %v3547_v48 = vld [vmem:[#allocation6 + $0x20] ss:$16 sps:$4 sm:$0xff]  }
  0x57   :  { %877 = vmatprep.subr.bf16.mxu0 %v3542_v45  ;;  %v3548_v49 = vld [vmem:[#allocation6 + $0x44] ss:$16 sps:$4 sm:$0xff]   ;;  %v3552_v50 = vld [vmem:[#allocation6 + $0x4c] ss:$16 sps:$4 sm:$0xff]   ;;  %v3550_v51 = vld [vmem:[#allocation6 + $0x48] ss:$16 sps:$4 sm:$0xff]  }
  0x58   :  { %v3553_v52 = vld [vmem:[#allocation6 + $0x40] ss:$16 sps:$4 sm:$0xff]   ;;  %v3554_v53 = vld [vmem:[#allocation6 + $0x64] ss:$16 sps:$4 sm:$0xff]   ;;  %v3558_v54 = vld [vmem:[#allocation6 + $0x6c] ss:$16 sps:$4 sm:$0xff]  }
  0x59   :  { %3451 = vmatpush3.bf16.msra.mxu1 %v3507_v4  ;;  %v3556_v55 = vld [vmem:[#allocation6 + $0x68] ss:$16 sps:$4 sm:$0xff]   ;;  %v3559_v56 = vld [vmem:[#allocation6 + $0x60] ss:$16 sps:$4 sm:$0xff]   ;;  %v3560_v57 = vld [vmem:[#allocation6 + $0x84] ss:$16 sps:$4 sm:$0xff]  }
  0x5a   :  { %3452 = vmatprep.subr.bf16.mxu1 %v4098_v0  ;;  %878 = vmatpush1.bf16.msra.mxu0 %v3547_v48  ;;  %v3564_v58 = vld [vmem:[#allocation6 + $0x8c] ss:$16 sps:$4 sm:$0xff]   ;;  %v3562_v59 = vld [vmem:[#allocation6 + $0x88] ss:$16 sps:$4 sm:$0xff]   ;;  %v3565_v60 = vld [vmem:[#allocation6 + $0x80] ss:$16 sps:$4 sm:$0xff]  }
  0x5b   :  { %879 = vmatprep.subr.bf16.mxu0 %v3548_v49  ;;  %v3566_v61 = vld [vmem:[#allocation6 + $0xa4] ss:$16 sps:$4 sm:$0xff]   ;;  %v3570_v62 = vld [vmem:[#allocation6 + $0xac] ss:$16 sps:$4 sm:$0xff]   ;;  %v3568_v63 = vld [vmem:[#allocation6 + $0xa8] ss:$16 sps:$4 sm:$0xff]  }
  0x5c   :  { %v3571_v1 = vld [vmem:[#allocation6 + $0xa0] ss:$16 sps:$4 sm:$0xff]   ;;  %v3572_v2 = vld [vmem:[#allocation6 + $0xc4] ss:$16 sps:$4 sm:$0xff]   ;;  %v3576_v3 = vld [vmem:[#allocation6 + $0xcc] ss:$16 sps:$4 sm:$0xff]  }
  0x5d   :  { %3453 = vmatpush3.bf16.msra.mxu1 %v3508_v5  ;;  %v3574_v4 = vld [vmem:[#allocation6 + $0xc8] ss:$16 sps:$4 sm:$0xff]   ;;  %v3577_v5 = vld [vmem:[#allocation6 + $0xc0] ss:$16 sps:$4 sm:$0xff]   ;;  %v3584_v10 = vld [vmem:[#allocation6 + $0x104] ss:$16 sps:$4 sm:$0xff]  }
  0x5e   :  { %3454 = vmatprep.subr.bf16.mxu1 %v4098_v0  ;;  %880 = vmatpush1.bf16.msra.mxu0 %v3553_v52  ;;  %v3583_v9 = vld [vmem:[#allocation6 + $0xe0] ss:$16 sps:$4 sm:$0xff]  }
  0x5f   :  { %881 = vmatprep.subr.bf16.mxu0 %v3554_v53  ;;  %v3613_v29 = vld [vmem:[#allocation6 + $0x180] ss:$16 sps:$4 sm:$0xff]  }
  0x61   :  { %3455 = vmatpush3.bf16.msra.mxu1 %v3509_v6  ;;  %v3578_v6 = vld [vmem:[#allocation6 + $0xe4] ss:$16 sps:$4 sm:$0xff]  }
  0x62   :  { %3456 = vmatprep.subr.bf16.mxu1 %v4098_v0  ;;  %882 = vmatpush1.bf16.msra.mxu0 %v3559_v56 }
  0x63   :  { %883 = vmatprep.subr.bf16.mxu0 %v3560_v57 }
  0x65   :  { %3457 = vmatpush3.bf16.msra.mxu1 %v3510_v7  ;;  %v3582_v7 = vld [vmem:[#allocation6 + $0xec] ss:$16 sps:$4 sm:$0xff]  }
  0x66   :  { %3458 = vmatprep.subr.bf16.mxu1 %v4098_v0  ;;  %884 = vmatpush1.bf16.msra.mxu0 %v3565_v60 }
  0x67   :  { %885 = vmatprep.subr.bf16.mxu0 %v3566_v61 }
  0x69   :  { %3459 = vmatpush3.bf16.msra.mxu1 %v3511_v8  ;;  %v3580_v8 = vld [vmem:[#allocation6 + $0xe8] ss:$16 sps:$4 sm:$0xff]  }
  0x6a   :  { %321 = vmatprep.subr.bf16.mxu1 %v3514_v11  ;;  %886 = vmatpush1.bf16.msra.mxu0 %v3571_v1  ;;  %v3588_v11 = vld [vmem:[#allocation6 + $0x10c] ss:$16 sps:$4 sm:$0xff]  }
  0x6b   :  { %887 = vmatprep.subr.bf16.mxu0 %v3572_v2 }
  0x6c   :  { %3461 = vmatmul.mubr.bf16.vlgmr.msra.gmra.mrb[0].mxu1 %v105_v13  ;;  %v3589_v13 = vld [vmem:[#allocation6 + $0x100] ss:$16 sps:$4 sm:$0xff]  }
  0x6d   :  { %322 = vmatpush1.bf16.msra.mxu1 %v3512_v12  ;;  %353 = vmatprep.mubr.bf16.mxu1 %v4100_v28  ;;  %v3586_v12 = vld [vmem:[#allocation6 + $0x108] ss:$16 sps:$4 sm:$0xff]  }
  0x6e   :  { %323 = vmatprep.subr.bf16.mxu1 %v3517_v14  ;;  %888 = vmatpush1.bf16.msra.mxu0 %v3577_v5  ;;  %v3590_v14 = vld [vmem:[#allocation6 + $0x124] ss:$16 sps:$4 sm:$0xff]   ;;  %v3610_v28 = vld [vmem:[#allocation6 + $0x188] ss:$16 sps:$4 sm:$0xff]  }
  0x6f   :  { %889 = vmatprep.subr.bf16.mxu0 %v3578_v6 }
  0x71   :  { %324 = vmatpush1.bf16.msra.mxu1 %v3515_v15  ;;  %v3594_v15 = vld [vmem:[#allocation6 + $0x12c] ss:$16 sps:$4 sm:$0xff]  }
  0x72   :  { %325 = vmatprep.subr.bf16.mxu1 %v3520_v16  ;;  %890 = vmatpush1.bf16.msra.mxu0 %v3583_v9  ;;  %v3592_v16 = vld [vmem:[#allocation6 + $0x128] ss:$16 sps:$4 sm:$0xff]  }
  0x73   :  { %891 = vmatprep.subr.bf16.mxu0 %v3584_v10 }
  0x75   :  { %326 = vmatpush1.bf16.msra.mxu1 %v3518_v17  ;;  %v3595_v17 = vld [vmem:[#allocation6 + $0x120] ss:$16 sps:$4 sm:$0xff]  }
  0x76   :  { %327 = vmatprep.subr.bf16.mxu1 %v3523_v18  ;;  %892 = vmatpush1.bf16.msra.mxu0 %v3589_v13  ;;  %v3596_v18 = vld [vmem:[#allocation6 + $0x144] ss:$16 sps:$4 sm:$0xff]  }
  0x77   :  { %893 = vmatprep.subr.bf16.mxu0 %v3590_v14 }
  0x79   :  { %328 = vmatpush1.bf16.msra.mxu1 %v3521_v19  ;;  %v3600_v19 = vld [vmem:[#allocation6 + $0x14c] ss:$16 sps:$4 sm:$0xff]  }
  0x7a   :  { %329 = vmatprep.subr.bf16.mxu1 %v3526_v20  ;;  %894 = vmatpush1.bf16.msra.mxu0 %v3595_v17  ;;  %v3598_v20 = vld [vmem:[#allocation6 + $0x148] ss:$16 sps:$4 sm:$0xff]  }
  0x7b   :  { %895 = vmatprep.subr.bf16.mxu0 %v3596_v18 }
  0x7d   :  { %330 = vmatpush1.bf16.msra.mxu1 %v3524_v21  ;;  %v3601_v21 = vld [vmem:[#allocation6 + $0x140] ss:$16 sps:$4 sm:$0xff]  }
  0x7e   :  { %331 = vmatprep.subr.bf16.mxu1 %v3529_v22  ;;  %896 = vmatpush1.bf16.msra.mxu0 %v3601_v21  ;;  %v3602_v22 = vld [vmem:[#allocation6 + $0x164] ss:$16 sps:$4 sm:$0xff]  }
  0x7f   :  { %897 = vmatprep.subr.bf16.mxu0 %v3602_v22 }
  0x81   :  { %332 = vmatpush1.bf16.msra.mxu1 %v3527_v23  ;;  %v3606_v23 = vld [vmem:[#allocation6 + $0x16c] ss:$16 sps:$4 sm:$0xff]  }
  0x82   :  { %333 = vmatprep.subr.bf16.mxu1 %v3532_v24  ;;  %v3604_v24 = vld [vmem:[#allocation6 + $0x168] ss:$16 sps:$4 sm:$0xff]  }
  0x85   :  { %334 = vmatpush1.bf16.msra.mxu1 %v3530_v25  ;;  %v3607_v25 = vld [vmem:[#allocation6 + $0x160] ss:$16 sps:$4 sm:$0xff]  }
  0x86   :  { %335 = vmatprep.subr.bf16.mxu1 %v3535_v26  ;;  %898 = vmatpush1.bf16.msra.mxu0 %v3607_v25  ;;  %v3608_v26 = vld [vmem:[#allocation6 + $0x184] ss:$16 sps:$4 sm:$0xff]  }
  0x87   :  { %899 = vmatprep.subr.bf16.mxu0 %v3608_v26 }
  0x89   :  { %336 = vmatpush1.bf16.msra.mxu1 %v3533_v27  ;;  %v3612_v27 = vld [vmem:[#allocation6 + $0x18c] ss:$16 sps:$4 sm:$0xff]  }
  0x8a   :  { %918 = vmatprep.subr.bf16.mxu1 %v3540_v30  ;;  %900 = vmatpush1.bf16.msra.mxu0 %v3613_v29  ;;  %v3614_v30 = vld [vmem:[#allocation6 + $0x1a4] ss:$16 sps:$4 sm:$0xff]  }
  0x8b   :  { %901 = vmatprep.subr.bf16.mxu0 %v3614_v30 }
 0x13f   :  { %v211_v32 = vpop.f32.mrb[0].mxu1 }
 0x140   :  { %v212_v33 = vadd.f32 %v3062_v31, %v211_v32  ;;  %v3462_v34 = vpop.f32.mrb[1].mxu1  ;;  %v3616_v32 = vld [vmem:[#allocation6 + $0x1a8] ss:$16 sps:$4 sm:$0xff]  }
 0x141   :  { %v214_v35 = vpop.f32.mrb[2].mxu1  ;;  %v3620_v34 = vld [vmem:[#allocation6 + $0x1c4] ss:$16 sps:$4 sm:$0xff]  }
 0x142   :  { %v220_v36 = vmul.f32 0.2, %v212_v33  ;;  %v215_v37 = vadd.f32 %v3062_v31, %v214_v35  ;;  %v3463_v38 = vpop.f32.mrb[3].mxu1  ;;  %vm218_vm1 = vcmp.gt.f32.partialorder %v212_v33, 0.0  ;;  %v3618_v31 = vld [vmem:[#allocation6 + $0x1ac] ss:$16 sps:$4 sm:$0xff]  }
 0x143   :  { %v3624_v35 = vld [vmem:[#allocation6 + $0x1cc] ss:$16 sps:$4 sm:$0xff]   ;;  %v3626_v38 = vld [vmem:[#allocation6 + $0x1e4] ss:$16 sps:$4 sm:$0xff]  }
 0x144   :  { %vm219_vm2 = vcmp.gt.f32.partialorder %v215_v37, 0.0  ;;  %v221_v39 = vmul.f32 0.2, %v215_v37  ;;  %v222_v40 = vsel %vm218_vm1, %v212_v33, %v220_v36  ;;  %v3619_v33 = vld [vmem:[#allocation6 + $0x1a0] ss:$16 sps:$4 sm:$0xff]  }
 0x145   :  { %902 = vmatpush1.bf16.msra.mxu0 %v3619_v33  ;;  %v3622_v36 = vld [vmem:[#allocation6 + $0x1c8] ss:$16 sps:$4 sm:$0xff]   ;;  %v364_v33 = vld [vmem:[%s4422_s4] sm:$0x3] }
 0x146   :  { %v223_v41 = vsel %vm219_vm2, %v215_v37, %v221_v39  ;;  %v3625_v37 = vld [vmem:[#allocation6 + $0x1c0] ss:$16 sps:$4 sm:$0xff]   ;;  %903 = vmatprep.subr.bf16.mxu0 %v3620_v34  ;;  %v3630_v39 = vld [vmem:[#allocation6 + $0x1ec] ss:$16 sps:$4 sm:$0xff]  }
 0x147   :  { %v224_v43 = vpack.c.bf16 %v223_v41, %v222_v40  ;;  %v3628_v40 = vld [vmem:[#allocation6 + $0x1e8] ss:$16 sps:$4 sm:$0xff]   ;;  %v3631_v41 = vld [vmem:[#allocation6 + $0x1e0] ss:$16 sps:$4 sm:$0xff]  }
 0x149   :  { %354 = vmatmul.mubr.bf16.vlgmr.msra.gmra.mrb[4].mxu1 %v224_v43  ;;  %904 = vmatpush1.bf16.msra.mxu0 %v3625_v37 }
 0x14a   :  { %919 = vmatpush1.bf16.msra.mxu1 %v3538_v42  ;;  %905 = vmatprep.subr.bf16.mxu0 %v3626_v38  ;;  %v94_v42 = vlaneseq }
 0x14b   :  { %920 = vmatprep.subr.bf16.mxu1 %v3546_v46 }
 0x14c   :  { %v4228_v43 = vshrl.u32 %v94_v42, 7 }
 0x14d   :  { %906 = vmatpush1.bf16.msra.mxu0 %v3631_v41 }
 0x14e   :  { %921 = vmatpush1.bf16.msra.mxu1 %v3544_v47  ;;  %v96_v44 = vadd.s32 8, %v4228_v43  ;;  %v4259_v34 = vsub.s32 1, %v4228_v43 }
 0x14f   :  { %922 = vmatprep.subr.bf16.mxu1 %v3552_v50 }
 0x150   :  { %vm98_vm3 = vcmp.lt.s32.totalorder %v96_v44, 12  ;;  %v424_v38 = vrot.slane %v364_v33, %v4259_v34 }
 0x151   :  { %v4234_v46 = vsel %vm98_vm3, 1.0, %v4098_v0 }
 0x152   :  { %923 = vmatpush1.bf16.msra.mxu1 %v3550_v51 }
 0x153   :  { %924 = vmatprep.subr.bf16.mxu1 %v3558_v54 }
 0x156   :  { %925 = vmatpush1.bf16.msra.mxu1 %v3556_v55 }
 0x157   :  { %926 = vmatprep.subr.bf16.mxu1 %v3564_v58 }
 0x15a   :  { %927 = vmatpush1.bf16.msra.mxu1 %v3562_v59 }
 0x15b   :  { %928 = vmatprep.subr.bf16.mxu1 %v3570_v62 }
 0x15e   :  { %929 = vmatpush1.bf16.msra.mxu1 %v3568_v63 }
 0x15f   :  { %930 = vmatprep.subr.bf16.mxu1 %v3576_v3 }
 0x162   :  { %931 = vmatpush1.bf16.msra.mxu1 %v3574_v4 }
 0x163   :  { %932 = vmatprep.subr.bf16.mxu1 %v3582_v7 }
 0x166   :  { %933 = vmatpush1.bf16.msra.mxu1 %v3580_v8 }
 0x167   :  { %934 = vmatprep.subr.bf16.mxu1 %v3588_v11 }
 0x16a   :  { %935 = vmatpush1.bf16.msra.mxu1 %v3586_v12 }
 0x16b   :  { %936 = vmatprep.subr.bf16.mxu1 %v3594_v15 }
 0x16e   :  { %937 = vmatpush1.bf16.msra.mxu1 %v3592_v16 }
 0x16f   :  { %938 = vmatprep.subr.bf16.mxu1 %v3600_v19 }
 0x172   :  { %939 = vmatpush1.bf16.msra.mxu1 %v3598_v20 }
 0x173   :  { %940 = vmatprep.subr.bf16.mxu1 %v3606_v23 }
 0x176   :  { %941 = vmatpush1.bf16.msra.mxu1 %v3604_v24 }
 0x177   :  { %942 = vmatprep.subr.bf16.mxu1 %v3612_v27 }
 0x17a   :  { %943 = vmatpush1.bf16.msra.mxu1 %v3610_v28 }
 0x17b   :  { %944 = vmatprep.subr.bf16.mxu1 %v3618_v31 }
 0x17e   :  { %945 = vmatpush1.bf16.msra.mxu1 %v3616_v32  ;;  %v4253_v32 = vsub.s32 0, %v4228_v43 }
 0x17f   :  { %946 = vmatprep.subr.bf16.mxu1 %v3624_v35  ;;  %v4101_v35 = vmov 1966171168  }
 0x180   :  { %v420_v37 = vrot.slane %v364_v33, %v4253_v32  ;;  %v3664_v33 = vld [vmem:[#allocation7 + $0x11c] ss:$28 sps:$4 sm:$0xff]  }
 0x182   :  { %947 = vmatpush1.bf16.msra.mxu1 %v3622_v36  ;;  %v435_v36 = vunpack.c.l.s4 %v4101_v35  ;;  %v3667_v35 = vld [vmem:[#allocation7 + $0x124] ss:$28 sps:$4 sm:$0xff]  }
 0x183   :  { %948 = vmatprep.subr.bf16.mxu1 %v3630_v39 }
 0x186   :  { %949 = vmatpush1.bf16.msra.mxu1 %v3628_v40  ;;  %v436_v40 = vunpack.c.0.s8 %v435_v36  ;;  %v3662_v36 = vld [vmem:[#allocation7 + $0x118] ss:$28 sps:$4 sm:$0xff]  }
 0x21c   :  { %v4231_v45 = vpop.f32.mrb[4].mxu1 }
 0x21d   :  { %v4236_v47 = vpop.f32.mrb[5].mxu1  ;;  %v384_v52 = vmul.f32 %v4231_v45, %v4231_v45 }
 0x21e   :  { %v4238_v48 = vpop.f32.mrb[6].mxu1  ;;  %v385_v0 = vmul.f32 %v4236_v47, %v4236_v47 }
 0x21f   :  { %v368_v49 = vmul.f32 %v4234_v46, %v4238_v48  ;;  %v4242_v50 = vpop.f32.mrb[7].mxu1 }
 0x220   :  { %v369_v51 = vmul.f32 %v4234_v46, %v4242_v50 }
 0x221   :  { %v370_v53 = vadd.f32 %v368_v49, %v4231_v45  ;;  %v386_v54 = vmul.f32 %v368_v49, %v368_v49 }
 0x222   :  { %v377_v55 = vadd.f32 %v369_v51, %v4236_v47  ;;  %v387_v56 = vmul.f32 %v369_v51, %v369_v51 }
 0x223   :  { %v371_v57 = vrot.slane %v370_v53, 4  ;;  %v388_v58 = vadd.f32 %v386_v54, %v384_v52 }
 0x224   :  { %v378_v59 = vrot.slane %v377_v55, 4  ;;  %v395_v60 = vadd.f32 %v387_v56, %v385_v0 }
 0x225   :  { %v372_v61 = vadd.f32 %v371_v57, %v370_v53  ;;  %v389_v62 = vrot.slane %v388_v58, 4  ;;  %v4265_v53 = vsub.s32 %v436_v40, %v4228_v43  ;;  %v3668_v40 = vld [vmem:[#allocation7 + $0x150] ss:$28 sps:$4 sm:$0xff]  }
 0x226   :  { %v379_v63 = vadd.f32 %v378_v59, %v377_v55  ;;  %v396_v1 = vrot.slane %v395_v60, 4 }
 0x227   :  { %v373_v2 = vrot.slane %v372_v61, 2  ;;  %v390_v3 = vadd.f32 %v389_v62, %v388_v58 }
 0x228   :  { %v380_v4 = vrot.slane %v379_v63, 2  ;;  %v397_v5 = vadd.f32 %v396_v1, %v395_v60  ;;  %v365_v60 = vld [vmem:[%s4423_s5] sm:$0x3] }
 0x229   :  { %v374_v6 = vadd.f32 %v373_v2, %v372_v61  ;;  %v391_v7 = vrot.slane %v390_v3, 2 }
 0x22a   :  { %v381_v8 = vadd.f32 %v380_v4, %v379_v63  ;;  %v398_v9 = vrot.slane %v397_v5, 2 }
 0x22b   :  { %v375_v10 = vrot.slane %v374_v6, 1  ;;  %v392_v11 = vadd.f32 %v391_v7, %v390_v3 }
 0x22c   :  { %v382_v12 = vrot.slane %v381_v8, 1  ;;  %v399_v13 = vadd.f32 %v398_v9, %v397_v5 }
 0x22d   :  { %v376_v14 = vadd.f32 %v375_v10, %v374_v6  ;;  %v393_v15 = vrot.slane %v392_v11, 1 }
 0x22e   :  { %v383_v16 = vadd.f32 %v382_v12, %v381_v8  ;;  %v400_v17 = vrot.slane %v399_v13, 1  ;;  %v3634_v12 = vld [vmem:[#allocation7 + $0x4] ss:$28 sps:$4 sm:$0xff]  }
 0x22f   :  { %v394_v18 = vadd.f32 %v393_v15, %v392_v11  ;;  %v402_v19 = vmul.f32 0.083333336, %v376_v14  ;;  %v3632_v14 = vld [vmem:[#allocation7] ss:$28 sps:$4 sm:$0xff]   ;;  %v3635_v15 = vld [vmem:[#allocation7 + $0x8] ss:$28 sps:$4 sm:$0xff]   ;;  %2648 = vmatprep.subr.bf16.mxu0 %v3634_v12 }
 0x230   :  { %v401_v20 = vadd.f32 %v400_v17, %v399_v13  ;;  %v403_v21 = vmul.f32 0.083333336, %v383_v16  ;;  %v3637_v13 = vld [vmem:[#allocation7 + $0xc] ss:$28 sps:$4 sm:$0xff]   ;;  %v3640_v16 = vld [vmem:[#allocation7 + $0x3c] ss:$28 sps:$4 sm:$0xff]  }
 0x231   :  { %v404_v22 = vmul.f32 0.083333336, %v394_v18  ;;  %v406_v23 = vmul.f32 %v402_v19, %v402_v19  ;;  %2734 = vmatprep.subr.bf16.mxu1 %v3637_v13  ;;  %v3643_v17 = vld [vmem:[#allocation7 + $0x44] ss:$28 sps:$4 sm:$0xff]   ;;  %v3638_v18 = vld [vmem:[#allocation7 + $0x38] ss:$28 sps:$4 sm:$0xff]  }
 0x232   :  { %v405_v24 = vmul.f32 0.083333336, %v401_v20  ;;  %v407_v25 = vmul.f32 %v403_v21, %v403_v21  ;;  %v3646_v20 = vld [vmem:[#allocation7 + $0x74] ss:$28 sps:$4 sm:$0xff]   ;;  %v3724_v13 = vld [vmem:[#allocation7 + $0x34c] ss:$28 sps:$4 sm:$0xff]  }
 0x233   :  { %v408_v26 = vsub.f32 %v404_v22, %v406_v23  ;;  %v3644_v22 = vld [vmem:[#allocation7 + $0x70] ss:$28 sps:$4 sm:$0xff]   ;;  %v3647_v23 = vld [vmem:[#allocation7 + $0x78] ss:$28 sps:$4 sm:$0xff]  }
 0x234   :  { %v409_v27 = vsub.f32 %v405_v24, %v407_v25  ;;  %v3652_v24 = vld [vmem:[#allocation7 + $0xac] ss:$28 sps:$4 sm:$0xff]   ;;  %v3655_v25 = vld [vmem:[#allocation7 + $0xb4] ss:$28 sps:$4 sm:$0xff]  }
 0x235   :  { %v410_v28 = vmax.f32 %v408_v26, 0.0  ;;  %v3650_v26 = vld [vmem:[#allocation7 + $0xa8] ss:$28 sps:$4 sm:$0xff]   ;;  %v3719_v12 = vld [vmem:[#allocation7 + $0x318] ss:$28 sps:$4 sm:$0xff]  }
 0x236   :  { %v411_v29 = vmax.f32 %v409_v27, 0.0  ;;  %v3653_v27 = vld [vmem:[#allocation7 + $0xb0] ss:$28 sps:$4 sm:$0xff]  }
 0x237   :  { %v412_v30 = vadd.f32 1e-05, %v410_v28  ;;  %v3658_v28 = vld [vmem:[#allocation7 + $0xe4] ss:$28 sps:$4 sm:$0xff]  }
 0x238   :  { %v413_v31 = vadd.f32 1e-05, %v411_v29  ;;  %v3661_v29 = vld [vmem:[#allocation7 + $0xec] ss:$28 sps:$4 sm:$0xff]  }
 0x239   :  { %3952 = vrsqrt.f32 %v412_v30  ;;  %v3656_v30 = vld [vmem:[#allocation7 + $0xe0] ss:$28 sps:$4 sm:$0xff]  }
 0x23a   :  { %3954 = vrsqrt.f32 %v413_v31  ;;  %v3659_v31 = vld [vmem:[#allocation7 + $0xe8] ss:$28 sps:$4 sm:$0xff]  }
 0x243   :  { %v3953_v39 = vpop.eup %3952 }
 0x244   :  { %v3955_v41 = vpop.eup %3954  ;;  %v427_v42 = vmul.f32 %v3953_v39, %v420_v37  ;;  %v3665_v37 = vld [vmem:[#allocation7 + $0x120] ss:$28 sps:$4 sm:$0xff]  }
 0x245   :  { %v428_v44 = vmul.f32 %v3955_v41, %v424_v38  ;;  %v3670_v38 = vld [vmem:[#allocation7 + $0x154] ss:$28 sps:$4 sm:$0xff]   ;;  %v3673_v39 = vld [vmem:[#allocation7 + $0x15c] ss:$28 sps:$4 sm:$0xff]  }
 0x246   :  { %v429_v49 = vmul.f32 %v427_v42, %v402_v19  ;;  %v453_v51 = vrot.slane %v427_v42, %v4253_v32  ;;  %v3641_v19 = vld [vmem:[#allocation7 + $0x40] ss:$28 sps:$4 sm:$0xff]   ;;  %v3671_v41 = vld [vmem:[#allocation7 + $0x158] ss:$28 sps:$4 sm:$0xff]   ;;  %v3676_v42 = vld [vmem:[#allocation7 + $0x18c] ss:$28 sps:$4 sm:$0xff]  }
 0x247   :  { %v430_v52 = vmul.f32 %v428_v44, %v403_v21  ;;  %v457_v54 = vrot.slane %v428_v44, %v4253_v32  ;;  %v3649_v21 = vld [vmem:[#allocation7 + $0x7c] ss:$28 sps:$4 sm:$0xff]   ;;  %v3679_v44 = vld [vmem:[#allocation7 + $0x194] ss:$28 sps:$4 sm:$0xff]  }
 0x248   :  { %v458_v0 = vmul.f32 %v453_v51, %v4231_v45  ;;  %v460_v55 = vmul.f32 %v453_v51, %v4238_v48  ;;  %v3677_v51 = vld [vmem:[#allocation7 + $0x190] ss:$28 sps:$4 sm:$0xff]  }
 0x249   :  { %v433_v56 = vcombine.low %v429_v49, %v430_v52  ;;  %v459_v57 = vmul.f32 %v457_v54, %v4236_v47  ;;  %v461_v58 = vmul.f32 %v457_v54, %v4242_v50  ;;  %v3674_v49 = vld [vmem:[#allocation7 + $0x188] ss:$28 sps:$4 sm:$0xff]  }
 0x24a   :  { %v3682_v52 = vld [vmem:[#allocation7 + $0x1c4] ss:$28 sps:$4 sm:$0xff]   ;;  %v3685_v54 = vld [vmem:[#allocation7 + $0x1cc] ss:$28 sps:$4 sm:$0xff]  }
 0x24b   :  { %v440_v59 = vrot.slane %v433_v56, %v4265_v53  ;;  %v3688_v56 = vld [vmem:[#allocation7 + $0x1fc] ss:$28 sps:$4 sm:$0xff]  }
 0x24d   :  { %v447_v61 = vrot.slane %v440_v59, %v4265_v53  ;;  %v3689_v59 = vld [vmem:[#allocation7 + $0x200] ss:$28 sps:$4 sm:$0xff]  }
 0x24f   :  { %v449_v62 = vsub.f32 %v365_v60, %v447_v61  ;;  %v3694_v60 = vld [vmem:[#allocation7 + $0x234] ss:$28 sps:$4 sm:$0xff]   ;;  %v3697_v61 = vld [vmem:[#allocation7 + $0x23c] ss:$28 sps:$4 sm:$0xff]  }
 0x251   :  { %v466_v63 = vrot.slane %v449_v62, %v4253_v32  ;;  %v470_v45 = vrot.slane %v449_v62, %v4259_v34  ;;  %v3692_v62 = vld [vmem:[#allocation7 + $0x230] ss:$28 sps:$4 sm:$0xff]  }
 0x253   :  { %v476_v1 = vadd.f32 %v470_v45, %v461_v58  ;;  %v474_v48 = vadd.f32 %v470_v45, %v459_v57  ;;  %v473_v2 = vadd.f32 %v466_v63, %v458_v0  ;;  %v475_v3 = vadd.f32 %v466_v63, %v460_v55  ;;  %v3680_v0 = vld [vmem:[#allocation7 + $0x1c0] ss:$28 sps:$4 sm:$0xff]   ;;  %v3683_v55 = vld [vmem:[#allocation7 + $0x1c8] ss:$28 sps:$4 sm:$0xff]   ;;  %v3686_v58 = vld [vmem:[#allocation7 + $0x1f8] ss:$28 sps:$4 sm:$0xff]  }
 0x254   :  { %v3691_v57 = vld [vmem:[#allocation7 + $0x204] ss:$28 sps:$4 sm:$0xff]   ;;  %v3695_v63 = vld [vmem:[#allocation7 + $0x238] ss:$28 sps:$4 sm:$0xff]   ;;  %v3700_v45 = vld [vmem:[#allocation7 + $0x26c] ss:$28 sps:$4 sm:$0xff]  }
 0x255   :  { %vm478_vm4 = vcmp.gt.f32.partialorder %v474_v48, 0.0  ;;  %vm480_vm5 = vcmp.gt.f32.partialorder %v476_v1, 0.0  ;;  %v482_v47 = vmul.f32 0.2, %v474_v48  ;;  %v484_v50 = vmul.f32 0.2, %v476_v1 }
 0x256   :  { %vm477_vm6 = vcmp.gt.f32.partialorder %v473_v2, 0.0  ;;  %vm479_vm7 = vcmp.gt.f32.partialorder %v475_v3, 0.0  ;;  %v481_v4 = vmul.f32 0.2, %v473_v2  ;;  %v483_v5 = vmul.f32 0.2, %v475_v3 }
 0x257   :  { %v486_v6 = vsel %vm478_vm4, %v474_v48, %v482_v47  ;;  %v488_v7 = vsel %vm480_vm5, %v476_v1, %v484_v50  ;;  %v3703_v1 = vld [vmem:[#allocation7 + $0x274] ss:$28 sps:$4 sm:$0xff]   ;;  %v3698_v48 = vld [vmem:[#allocation7 + $0x268] ss:$28 sps:$4 sm:$0xff]   ;;  %v3704_v50 = vld [vmem:[#allocation7 + $0x2a0] ss:$28 sps:$4 sm:$0xff]  }
 0x258   :  { %v490_v8 = vpack.c.bf16 %v488_v7, %v486_v6  ;;  %v485_v9 = vsel %vm477_vm6, %v473_v2, %v481_v4  ;;  %v487_v10 = vsel %vm479_vm7, %v475_v3, %v483_v5  ;;  %v3701_v2 = vld [vmem:[#allocation7 + $0x270] ss:$28 sps:$4 sm:$0xff]   ;;  %v3706_v3 = vld [vmem:[#allocation7 + $0x2a4] ss:$28 sps:$4 sm:$0xff]   ;;  %v3712_v5 = vld [vmem:[#allocation7 + $0x2dc] ss:$28 sps:$4 sm:$0xff]  }
 0x259   :  { %v489_v11 = vpack.c.bf16 %v487_v10, %v485_v9  ;;  %v3709_v47 = vld [vmem:[#allocation7 + $0x2ac] ss:$28 sps:$4 sm:$0xff]   ;;  %v3715_v6 = vld [vmem:[#allocation7 + $0x2e4] ss:$28 sps:$4 sm:$0xff]   ;;  %v3710_v7 = vld [vmem:[#allocation7 + $0x2d8] ss:$28 sps:$4 sm:$0xff]  }
 0x25a   :  { %907 = vmatprep.mubr.bf16.mxu0 %v490_v8  ;;  %950 = vmatprep.mubr.bf16.mxu1 %v490_v8  ;;  %v3707_v4 = vld [vmem:[#allocation7 + $0x2a8] ss:$28 sps:$4 sm:$0xff]   ;;  %v3713_v8 = vld [vmem:[#allocation7 + $0x2e0] ss:$28 sps:$4 sm:$0xff]   ;;  %v3718_v9 = vld [vmem:[#allocation7 + $0x314] ss:$28 sps:$4 sm:$0xff]  }
 0x25b   :  { %908 = vmatmul.mubr.bf16.vlgmr.msra.gmra.mrb[0].mxu0 %v489_v11  ;;  %951 = vmatmul.mubr.bf16.vlgmr.msra.gmra.mrb[8].mxu1 %v489_v11  ;;  %v3721_v10 = vld [vmem:[#allocation7 + $0x31c] ss:$28 sps:$4 sm:$0xff]   ;;  %v3716_v11 = vld [vmem:[#allocation7 + $0x310] ss:$28 sps:$4 sm:$0xff]  }
 0x25c   :  { %2649 = vmatpush1.bf16.msra.mxu0 %v3632_v14  ;;  %2735 = vmatpush1.bf16.msra.mxu1 %v3635_v15  ;;  %v3727_v14 = vld [vmem:[#allocation7 + $0x354] ss:$28 sps:$4 sm:$0xff]   ;;  %v3722_v15 = vld [vmem:[#allocation7 + $0x348] ss:$28 sps:$4 sm:$0xff]  }
 0x25d   :  { %2650 = vmatprep.subr.bf16.mxu0 %v3640_v16  ;;  %2736 = vmatprep.subr.bf16.mxu1 %v3643_v17  ;;  %v3725_v16 = vld [vmem:[#allocation7 + $0x350] ss:$28 sps:$4 sm:$0xff]   ;;  %v3730_v17 = vld [vmem:[#allocation7 + $0x384] ss:$28 sps:$4 sm:$0xff]  }
 0x260   :  { %2651 = vmatpush1.bf16.msra.mxu0 %v3638_v18  ;;  %2737 = vmatpush1.bf16.msra.mxu1 %v3641_v19  ;;  %v3733_v18 = vld [vmem:[#allocation7 + $0x38c] ss:$28 sps:$4 sm:$0xff]  }
 0x261   :  { %2652 = vmatprep.subr.bf16.mxu0 %v3646_v20  ;;  %2738 = vmatprep.subr.bf16.mxu1 %v3649_v21 }
 0x264   :  { %2653 = vmatpush1.bf16.msra.mxu0 %v3644_v22  ;;  %2739 = vmatpush1.bf16.msra.mxu1 %v3647_v23 }
 0x265   :  { %2654 = vmatprep.subr.bf16.mxu0 %v3652_v24  ;;  %2740 = vmatprep.subr.bf16.mxu1 %v3655_v25 }
 0x268   :  { %2655 = vmatpush1.bf16.msra.mxu0 %v3650_v26  ;;  %2741 = vmatpush1.bf16.msra.mxu1 %v3653_v27 }
 0x269   :  { %2656 = vmatprep.subr.bf16.mxu0 %v3658_v28  ;;  %2742 = vmatprep.subr.bf16.mxu1 %v3661_v29 }
 0x26c   :  { %2657 = vmatpush1.bf16.msra.mxu0 %v3656_v30  ;;  %2743 = vmatpush1.bf16.msra.mxu1 %v3659_v31 }
 0x26d   :  { %2658 = vmatprep.subr.bf16.mxu0 %v3664_v33  ;;  %2744 = vmatprep.subr.bf16.mxu1 %v3667_v35 }
 0x270   :  { %2659 = vmatpush1.bf16.msra.mxu0 %v3662_v36  ;;  %2745 = vmatpush1.bf16.msra.mxu1 %v3665_v37 }
 0x271   :  { %2660 = vmatprep.subr.bf16.mxu0 %v3670_v38  ;;  %2746 = vmatprep.subr.bf16.mxu1 %v3673_v39 }
 0x274   :  { %2661 = vmatpush1.bf16.msra.mxu0 %v3668_v40  ;;  %2747 = vmatpush1.bf16.msra.mxu1 %v3671_v41 }
 0x275   :  { %2662 = vmatprep.subr.bf16.mxu0 %v3676_v42  ;;  %2748 = vmatprep.subr.bf16.mxu1 %v3679_v44 }
 0x278   :  { %2663 = vmatpush1.bf16.msra.mxu0 %v3674_v49  ;;  %2749 = vmatpush1.bf16.msra.mxu1 %v3677_v51 }
 0x279   :  { %2664 = vmatprep.subr.bf16.mxu0 %v3682_v52  ;;  %2750 = vmatprep.subr.bf16.mxu1 %v3685_v54 }
 0x27c   :  { %2665 = vmatpush1.bf16.msra.mxu0 %v3680_v0  ;;  %2751 = vmatpush1.bf16.msra.mxu1 %v3683_v55 }
 0x27d   :  { %2666 = vmatprep.subr.bf16.mxu0 %v3688_v56  ;;  %2752 = vmatprep.subr.bf16.mxu1 %v3691_v57 }
 0x280   :  { %2667 = vmatpush1.bf16.msra.mxu0 %v3686_v58  ;;  %2753 = vmatpush1.bf16.msra.mxu1 %v3689_v59 }
 0x281   :  { %2668 = vmatprep.subr.bf16.mxu0 %v3694_v60  ;;  %2754 = vmatprep.subr.bf16.mxu1 %v3697_v61 }
 0x284   :  { %2669 = vmatpush1.bf16.msra.mxu0 %v3692_v62  ;;  %2755 = vmatpush1.bf16.msra.mxu1 %v3695_v63 }
 0x285   :  { %2670 = vmatprep.subr.bf16.mxu0 %v3700_v45  ;;  %2756 = vmatprep.subr.bf16.mxu1 %v3703_v1 }
 0x288   :  { %2671 = vmatpush1.bf16.msra.mxu0 %v3698_v48  ;;  %2757 = vmatpush1.bf16.msra.mxu1 %v3701_v2 }
 0x289   :  { %2672 = vmatprep.subr.bf16.mxu0 %v3706_v3  ;;  %2758 = vmatprep.subr.bf16.mxu1 %v3709_v47 }
 0x28c   :  { %2673 = vmatpush1.bf16.msra.mxu0 %v3704_v50  ;;  %2759 = vmatpush1.bf16.msra.mxu1 %v3707_v4 }
 0x28d   :  { %2674 = vmatprep.subr.bf16.mxu0 %v3712_v5  ;;  %2760 = vmatprep.subr.bf16.mxu1 %v3715_v6 }
 0x290   :  { %2675 = vmatpush1.bf16.msra.mxu0 %v3710_v7  ;;  %2761 = vmatpush1.bf16.msra.mxu1 %v3713_v8 }
 0x291   :  { %2676 = vmatprep.subr.bf16.mxu0 %v3718_v9  ;;  %2762 = vmatprep.subr.bf16.mxu1 %v3721_v10 }
 0x294   :  { %2677 = vmatpush1.bf16.msra.mxu0 %v3716_v11  ;;  %2763 = vmatpush1.bf16.msra.mxu1 %v3719_v12 }
 0x295   :  { %2678 = vmatprep.subr.bf16.mxu0 %v3724_v13  ;;  %2764 = vmatprep.subr.bf16.mxu1 %v3727_v14 }
 0x298   :  { %2679 = vmatpush1.bf16.msra.mxu0 %v3722_v15  ;;  %2765 = vmatpush1.bf16.msra.mxu1 %v3725_v16 }
 0x299   :  { %2691 = vmatprep.subr.bf16.mxu0 %v3730_v17  ;;  %2777 = vmatprep.subr.bf16.mxu1 %v3733_v18 }
 0x32e   :  { %v4279_v19 = vpop.f32.mrb[0].mxu0  ;;  %v4281_v20 = vpop.f32.mrb[8].mxu1 }
 0x32f   :  { %v4283_v21 = vpop.f32.mrb[1].mxu0  ;;  %v4285_v22 = vpop.f32.mrb[9].mxu1  ;;  %v999_v25 = vmul.f32 %v4279_v19, %v4279_v19  ;;  %v1001_v26 = vmul.f32 %v4281_v20, %v4281_v20 }
 0x330   :  { %v4287_v23 = vpop.f32.mrb[2].mxu0  ;;  %v4289_v24 = vpop.f32.mrb[10].mxu1  ;;  %v1000_v31 = vmul.f32 %v4283_v21, %v4283_v21  ;;  %v1002_v33 = vmul.f32 %v4285_v22, %v4285_v22 }
 0x331   :  { %v967_v27 = vmul.f32 %v4234_v46, %v4287_v23  ;;  %v969_v28 = vmul.f32 %v4234_v46, %v4289_v24  ;;  %v4299_v29 = vpop.f32.mrb[3].mxu0  ;;  %v4301_v30 = vpop.f32.mrb[11].mxu1 }
 0x332   :  { %v968_v35 = vmul.f32 %v4234_v46, %v4299_v29  ;;  %v970_v36 = vmul.f32 %v4234_v46, %v4301_v30 }
 0x333   :  { %v971_v37 = vadd.f32 %v967_v27, %v4279_v19  ;;  %v1003_v38 = vmul.f32 %v967_v27, %v967_v27  ;;  %v985_v39 = vadd.f32 %v969_v28, %v4281_v20  ;;  %v1005_v40 = vmul.f32 %v969_v28, %v969_v28 }
 0x334   :  { %v978_v41 = vadd.f32 %v968_v35, %v4283_v21  ;;  %v1004_v42 = vmul.f32 %v968_v35, %v968_v35  ;;  %v992_v44 = vadd.f32 %v970_v36, %v4285_v22  ;;  %v1006_v49 = vmul.f32 %v970_v36, %v970_v36 }
 0x335   :  { %v972_v51 = vrot.slane %v971_v37, 4  ;;  %v1007_v52 = vadd.f32 %v1003_v38, %v999_v25  ;;  %v986_v54 = vrot.slane %v985_v39, 4  ;;  %v1021_v0 = vadd.f32 %v1005_v40, %v1001_v26 }
 0x336   :  { %v979_v55 = vrot.slane %v978_v41, 4  ;;  %v1014_v56 = vadd.f32 %v1004_v42, %v1000_v31  ;;  %v993_v57 = vrot.slane %v992_v44, 4  ;;  %v1028_v46 = vadd.f32 %v1006_v49, %v1002_v33 }
 0x337   :  { %v973_v58 = vadd.f32 %v972_v51, %v971_v37  ;;  %v1008_v59 = vrot.slane %v1007_v52, 4  ;;  %v987_v60 = vadd.f32 %v986_v54, %v985_v39  ;;  %v1022_v61 = vrot.slane %v1021_v0, 4 }
 0x338   :  { %v980_v62 = vadd.f32 %v979_v55, %v978_v41  ;;  %v1015_v63 = vrot.slane %v1014_v56, 4  ;;  %v994_v45 = vadd.f32 %v993_v57, %v992_v44  ;;  %v1029_v1 = vrot.slane %v1028_v46, 4 }
 0x339   :  { %v974_v48 = vrot.slane %v973_v58, 2  ;;  %v1009_v2 = vadd.f32 %v1008_v59, %v1007_v52  ;;  %v988_v3 = vrot.slane %v987_v60, 2  ;;  %v1023_v47 = vadd.f32 %v1022_v61, %v1021_v0 }
 0x33a   :  { %v981_v50 = vrot.slane %v980_v62, 2  ;;  %v1016_v4 = vadd.f32 %v1015_v63, %v1014_v56  ;;  %v995_v5 = vrot.slane %v994_v45, 2  ;;  %v1030_v6 = vadd.f32 %v1029_v1, %v1028_v46 }
 0x33b   :  { %v975_v7 = vadd.f32 %v974_v48, %v973_v58  ;;  %v1010_v8 = vrot.slane %v1009_v2, 2  ;;  %v989_v9 = vadd.f32 %v988_v3, %v987_v60  ;;  %v1024_v10 = vrot.slane %v1023_v47, 2 }
 0x33c   :  { %v982_v11 = vadd.f32 %v981_v50, %v980_v62  ;;  %v1017_v12 = vrot.slane %v1016_v4, 2  ;;  %v996_v13 = vadd.f32 %v995_v5, %v994_v45  ;;  %v1031_v14 = vrot.slane %v1030_v6, 2 }
 0x33d   :  { %v976_v15 = vrot.slane %v975_v7, 1  ;;  %v1011_v16 = vadd.f32 %v1010_v8, %v1009_v2  ;;  %v990_v17 = vrot.slane %v989_v9, 1  ;;  %v1025_v18 = vadd.f32 %v1024_v10, %v1023_v47 }
 0x33e   :  { %v983_v25 = vrot.slane %v982_v11, 1  ;;  %v1018_v26 = vadd.f32 %v1017_v12, %v1016_v4  ;;  %v997_v27 = vrot.slane %v996_v13, 1  ;;  %v1032_v28 = vadd.f32 %v1031_v14, %v1030_v6 }
 0x33f   :  { %v977_v31 = vadd.f32 %v976_v15, %v975_v7  ;;  %v1012_v33 = vrot.slane %v1011_v16, 1  ;;  %v991_v35 = vadd.f32 %v990_v17, %v989_v9  ;;  %v1026_v36 = vrot.slane %v1025_v18, 1  ;;  %v961_v7 = vld [vmem:[%s4425_s7] sm:$0xf] }
 0x340   :  { %v984_v37 = vadd.f32 %v983_v25, %v982_v11  ;;  %v1019_v38 = vrot.slane %v1018_v26, 1  ;;  %v998_v39 = vadd.f32 %v997_v27, %v996_v13  ;;  %v1033_v40 = vrot.slane %v1032_v28, 1 }
 0x341   :  { %v1013_v41 = vadd.f32 %v1012_v33, %v1011_v16  ;;  %v1035_v42 = vmul.f32 0.083333336, %v977_v31  ;;  %v1027_v44 = vadd.f32 %v1026_v36, %v1025_v18  ;;  %v1037_v49 = vmul.f32 0.083333336, %v991_v35 }
 0x342   :  { %v1020_v51 = vadd.f32 %v1019_v38, %v1018_v26  ;;  %v1036_v52 = vmul.f32 0.083333336, %v984_v37  ;;  %v1034_v54 = vadd.f32 %v1033_v40, %v1032_v28  ;;  %v1038_v0 = vmul.f32 0.083333336, %v998_v39 }
 0x343   :  { %v1039_v55 = vmul.f32 0.083333336, %v1013_v41  ;;  %v1043_v56 = vmul.f32 %v1035_v42, %v1035_v42  ;;  %v1041_v57 = vmul.f32 0.083333336, %v1027_v44  ;;  %v1045_v46 = vmul.f32 %v1037_v49, %v1037_v49 }
 0x344   :  { %v1040_v58 = vmul.f32 0.083333336, %v1020_v51  ;;  %v1044_v59 = vmul.f32 %v1036_v52, %v1036_v52  ;;  %v1042_v60 = vmul.f32 0.083333336, %v1034_v54  ;;  %v1046_v61 = vmul.f32 %v1038_v0, %v1038_v0 }
 0x345   :  { %v1047_v62 = vsub.f32 %v1039_v55, %v1043_v56  ;;  %v1049_v63 = vsub.f32 %v1041_v57, %v1045_v46  ;;  %v4319_v8 = vsub.s32 2, %v4228_v43  ;;  %v4322_v9 = vsub.s32 3, %v4228_v43 }
 0x346   :  { %v1048_v45 = vsub.f32 %v1040_v58, %v1044_v59  ;;  %v1050_v1 = vsub.f32 %v1042_v60, %v1046_v61  ;;  %v1067_v10 = vrot.slane %v961_v7, %v4253_v32  ;;  %v1071_v12 = vrot.slane %v961_v7, %v4259_v34 }
 0x347   :  { %v1051_v48 = vmax.f32 %v1047_v62, 0.0  ;;  %v1053_v2 = vmax.f32 %v1049_v63, 0.0  ;;  %v1075_v11 = vrot.slane %v961_v7, %v4319_v8  ;;  %v1079_v14 = vrot.slane %v961_v7, %v4322_v9  ;;  %v3728_v7 = vld [vmem:[#allocation7 + $0x380] ss:$28 sps:$4 sm:$0xff]  }
 0x348   :  { %v1052_v3 = vmax.f32 %v1048_v45, 0.0  ;;  %v1054_v47 = vmax.f32 %v1050_v1, 0.0 }
 0x349   :  { %v1055_v50 = vadd.f32 1e-05, %v1051_v48  ;;  %v1057_v4 = vadd.f32 1e-05, %v1053_v2 }
 0x34a   :  { %v1056_v5 = vadd.f32 1e-05, %v1052_v3  ;;  %v1058_v6 = vadd.f32 1e-05, %v1054_v47 }
 0x34b   :  { %3956 = vrsqrt.f32 %v1055_v50 }
 0x34c   :  { %3958 = vrsqrt.f32 %v1057_v4 }
 0x34d   :  { %3960 = vrsqrt.f32 %v1056_v5 }
 0x34e   :  { %3962 = vrsqrt.f32 %v1058_v6 }
 0x355   :  { %v3957_v13 = vpop.eup %3956 }
 0x356   :  { %v3959_v15 = vpop.eup %3958  ;;  %v1084_v16 = vmul.f32 %v3957_v13, %v1067_v10  ;;  %v3731_v10 = vld [vmem:[#allocation7 + $0x388] ss:$28 sps:$4 sm:$0xff]  }
 0x357   :  { %v3961_v17 = vpop.eup %3960  ;;  %v1086_v18 = vmul.f32 %v3959_v15, %v1075_v11 }
 0x358   :  { %v3963_v25 = vpop.eup %3962  ;;  %v1088_v26 = vmul.f32 %v1084_v16, %v1035_v42  ;;  %v1125_v27 = vrot.slane %v1084_v16, %v4253_v32  ;;  %v1085_v28 = vmul.f32 %v3961_v17, %v1071_v12  ;;  %v3736_v17 = vld [vmem:[#allocation7 + $0x3bc] ss:$28 sps:$4 sm:$0xff]  }
 0x359   :  { %v1090_v31 = vmul.f32 %v1086_v18, %v1037_v49  ;;  %v1133_v33 = vrot.slane %v1086_v18, %v4253_v32  ;;  %v1087_v35 = vmul.f32 %v3963_v25, %v1079_v14  ;;  %v3739_v18 = vld [vmem:[#allocation7 + $0x3c4] ss:$28 sps:$4 sm:$0xff]  }
 0x35a   :  { %v1138_v36 = vmul.f32 %v1125_v27, %v4279_v19  ;;  %v1142_v37 = vmul.f32 %v1125_v27, %v4287_v23  ;;  %v1089_v38 = vmul.f32 %v1085_v28, %v1036_v52  ;;  %v1129_v39 = vrot.slane %v1085_v28, %v4253_v32  ;;  %v3734_v27 = vld [vmem:[#allocation7 + $0x3b8] ss:$28 sps:$4 sm:$0xff]   ;;  %v3737_v28 = vld [vmem:[#allocation7 + $0x3c0] ss:$28 sps:$4 sm:$0xff]  }
 0x35b   :  { %v1140_v40 = vmul.f32 %v1133_v33, %v4281_v20  ;;  %v1144_v41 = vmul.f32 %v1133_v33, %v4289_v24  ;;  %v1091_v44 = vmul.f32 %v1087_v35, %v1038_v0  ;;  %v1137_v42 = vrot.slane %v1087_v35, %v4253_v32  ;;  %v962_v24 = vld [vmem:[%s4426_s8] sm:$0xf]  ;;  %v3742_v33 = vld [vmem:[#allocation7 + $0x3f4] ss:$28 sps:$4 sm:$0xff]   ;;  %v3745_v35 = vld [vmem:[#allocation7 + $0x3fc] ss:$28 sps:$4 sm:$0xff]  }
 0x35c   :  { %v1096_v51 = vcombine.low %v1088_v26, %v1089_v38  ;;  %v1139_v49 = vmul.f32 %v1129_v39, %v4283_v21  ;;  %v1143_v54 = vmul.f32 %v1129_v39, %v4299_v29  ;;  %v3743_v38 = vld [vmem:[#allocation7 + $0x3f8] ss:$28 sps:$4 sm:$0xff]   ;;  %v3748_v39 = vld [vmem:[#allocation7 + $0x42c] ss:$28 sps:$4 sm:$0xff]  }
 0x35d   :  { %v1097_v55 = vcombine.low %v1090_v31, %v1091_v44  ;;  %v1141_v19 = vmul.f32 %v1137_v42, %v4285_v22  ;;  %v1145_v23 = vmul.f32 %v1137_v42, %v4301_v30  ;;  %v3749_v44 = vld [vmem:[#allocation7 + $0x430] ss:$28 sps:$4 sm:$0xff]   ;;  %v3754_v42 = vld [vmem:[#allocation7 + $0x464] ss:$28 sps:$4 sm:$0xff]  }
 0x35e   :  { %v1104_v52 = vrot.slane %v1096_v51, %v4265_v53  ;;  %v3757_v51 = vld [vmem:[#allocation7 + $0x46c] ss:$28 sps:$4 sm:$0xff]  }
 0x35f   :  { %v1111_v56 = vrot.slane %v1097_v55, %v4265_v53  ;;  %v3760_v55 = vld [vmem:[#allocation7 + $0x49c] ss:$28 sps:$4 sm:$0xff]  }
 0x361   :  { %v1112_v20 = vcombine.low %v1104_v52, %v1111_v56  ;;  %v3761_v52 = vld [vmem:[#allocation7 + $0x4a0] ss:$28 sps:$4 sm:$0xff]   ;;  %v3766_v56 = vld [vmem:[#allocation7 + $0x4d4] ss:$28 sps:$4 sm:$0xff]  }
 0x363   :  { %v1119_v0 = vrot.slane %v1112_v20, %v4265_v53  ;;  %v3769_v20 = vld [vmem:[#allocation7 + $0x4dc] ss:$28 sps:$4 sm:$0xff]  }
 0x365   :  { %v1121_v57 = vsub.f32 %v962_v24, %v1119_v0  ;;  %v3764_v24 = vld [vmem:[#allocation7 + $0x4d0] ss:$28 sps:$4 sm:$0xff]   ;;  %v3767_v0 = vld [vmem:[#allocation7 + $0x4d8] ss:$28 sps:$4 sm:$0xff]  }
 0x367   :  { %v1162_v21 = vrot.slane %v1121_v57, %v4322_v9  ;;  %v1154_v29 = vrot.slane %v1121_v57, %v4259_v34  ;;  %v1150_v22 = vrot.slane %v1121_v57, %v4253_v32  ;;  %v1158_v30 = vrot.slane %v1121_v57, %v4319_v8  ;;  %v3772_v57 = vld [vmem:[#allocation7 + $0x50c] ss:$28 sps:$4 sm:$0xff]  }
 0x369   :  { %v1170_v46 = vadd.f32 %v1162_v21, %v1141_v19  ;;  %v1174_v58 = vadd.f32 %v1162_v21, %v1145_v23  ;;  %v1168_v59 = vadd.f32 %v1154_v29, %v1139_v49  ;;  %v1172_v60 = vadd.f32 %v1154_v29, %v1143_v54  ;;  %v3752_v49 = vld [vmem:[#allocation7 + $0x460] ss:$28 sps:$4 sm:$0xff]   ;;  %v3755_v54 = vld [vmem:[#allocation7 + $0x468] ss:$28 sps:$4 sm:$0xff]   ;;  %v3758_v23 = vld [vmem:[#allocation7 + $0x498] ss:$28 sps:$4 sm:$0xff]  }
 0x36a   :  { %v1167_v61 = vadd.f32 %v1150_v22, %v1138_v36  ;;  %v1171_v62 = vadd.f32 %v1150_v22, %v1142_v37  ;;  %v1169_v63 = vadd.f32 %v1158_v30, %v1140_v40  ;;  %v1173_v45 = vadd.f32 %v1158_v30, %v1144_v41  ;;  %v3740_v37 = vld [vmem:[#allocation7 + $0x3f0] ss:$28 sps:$4 sm:$0xff]   ;;  %v3746_v41 = vld [vmem:[#allocation7 + $0x428] ss:$28 sps:$4 sm:$0xff]  }
 0x36b   :  { %vm1182_vm8 = vcmp.gt.f32.partialorder %v1174_v58, 0.0  ;;  %v1186_v1 = vmul.f32 0.2, %v1170_v46  ;;  %v1190_v53 = vmul.f32 0.2, %v1174_v58  ;;  %vm1176_vm9 = vcmp.gt.f32.partialorder %v1168_v59, 0.0 }
 0x36c   :  { %vm1180_vm10 = vcmp.gt.f32.partialorder %v1172_v60, 0.0  ;;  %v1184_v48 = vmul.f32 0.2, %v1168_v59  ;;  %v1188_v2 = vmul.f32 0.2, %v1172_v60  ;;  %vm1175_vm11 = vcmp.gt.f32.partialorder %v1167_v61, 0.0 }
 0x36d   :  { %v1198_v3 = vsel %vm1182_vm8, %v1174_v58, %v1190_v53  ;;  %vm1179_vm12 = vcmp.gt.f32.partialorder %v1171_v62, 0.0  ;;  %v1183_v47 = vmul.f32 0.2, %v1167_v61  ;;  %v1187_v50 = vmul.f32 0.2, %v1171_v62 }
 0x36e   :  { %v1192_v4 = vsel %vm1176_vm9, %v1168_v59, %v1184_v48  ;;  %v1196_v5 = vsel %vm1180_vm10, %v1172_v60, %v1188_v2  ;;  %vm1178_vm13 = vcmp.gt.f32.partialorder %v1170_v46, 0.0  ;;  %vm1177_vm14 = vcmp.gt.f32.partialorder %v1169_v63, 0.0  ;;  %v3751_v40 = vld [vmem:[#allocation7 + $0x434] ss:$28 sps:$4 sm:$0xff]   ;;  %v3763_v19 = vld [vmem:[#allocation7 + $0x4a4] ss:$28 sps:$4 sm:$0xff]  }
 0x36f   :  { %v4350_v6 = vpack.c.bf16 %v1196_v5, %v1192_v4  ;;  %v1191_v11 = vsel %vm1175_vm11, %v1167_v61, %v1183_v47  ;;  %v1195_v12 = vsel %vm1179_vm12, %v1171_v62, %v1187_v50  ;;  %v1194_v13 = vsel %vm1178_vm13, %v1170_v46, %v1186_v1  ;;  %v3775_v21 = vld [vmem:[#allocation7 + $0x514] ss:$28 sps:$4 sm:$0xff]   ;;  %v3770_v29 = vld [vmem:[#allocation7 + $0x508] ss:$28 sps:$4 sm:$0xff]   ;;  %v3776_v58 = vld [vmem:[#allocation7 + $0x540] ss:$28 sps:$4 sm:$0xff]  }
 0x370   :  { %v4352_v14 = vpack.c.bf16 %v1195_v12, %v1191_v11  ;;  %v4354_v15 = vpack.c.bf16 %v1198_v3, %v1194_v13  ;;  %vm1181_vm15 = vcmp.gt.f32.partialorder %v1173_v45, 0.0  ;;  %v1185_v16 = vmul.f32 0.2, %v1169_v63  ;;  %v3773_v22 = vld [vmem:[#allocation7 + $0x510] ss:$28 sps:$4 sm:$0xff]  }
 0x371   :  { %2680 = vmatprep.mubr.bf16.mxu0 %v4350_v6  ;;  %2766 = vmatprep.mubr.bf16.mxu1 %v4350_v6  ;;  %v1189_v25 = vmul.f32 0.2, %v1173_v45  ;;  %v3778_v30 = vld [vmem:[#allocation7 + $0x544] ss:$28 sps:$4 sm:$0xff]   ;;  %v3781_v46 = vld [vmem:[#allocation7 + $0x54c] ss:$28 sps:$4 sm:$0xff]  }
 0x372   :  { %2681 = vmatmul.mubr.bf16.vlgmr.msra.gmra.mrb[4].mxu0 %v4352_v14  ;;  %2767 = vmatmul.mubr.bf16.vlgmr.msra.gmra.mrb[12].mxu1 %v4352_v14  ;;  %v1193_v26 = vsel %vm1177_vm14, %v1169_v63, %v1185_v16  ;;  %v3779_v59 = vld [vmem:[#allocation7 + $0x548] ss:$28 sps:$4 sm:$0xff]   ;;  %v3784_v60 = vld [vmem:[#allocation7 + $0x57c] ss:$28 sps:$4 sm:$0xff]   ;;  %v3788_v53 = vld [vmem:[#allocation7 + $0x5b0] ss:$28 sps:$4 sm:$0xff]  }
 0x373   :  { %2692 = vmatpush1.bf16.msra.mxu0 %v3728_v7  ;;  %2778 = vmatpush1.bf16.msra.mxu1 %v3731_v10  ;;  %v1197_v31 = vsel %vm1181_vm15, %v1173_v45, %v1189_v25  ;;  %v3787_v61 = vld [vmem:[#allocation7 + $0x584] ss:$28 sps:$4 sm:$0xff]   ;;  %v3782_v62 = vld [vmem:[#allocation7 + $0x578] ss:$28 sps:$4 sm:$0xff]   ;;  %v3796_v2 = vld [vmem:[#allocation7 + $0x5ec] ss:$28 sps:$4 sm:$0xff]  }
 0x374   :  { %2723 = vmatprep.mubr.bf16.mxu0 %v4354_v15  ;;  %2809 = vmatprep.mubr.bf16.mxu1 %v4354_v15  ;;  %v4363_v36 = vpack.c.bf16 %v1197_v31, %v1193_v26  ;;  %v3785_v63 = vld [vmem:[#allocation7 + $0x580] ss:$28 sps:$4 sm:$0xff]   ;;  %v3790_v45 = vld [vmem:[#allocation7 + $0x5b4] ss:$28 sps:$4 sm:$0xff]   ;;  %v3794_v47 = vld [vmem:[#allocation7 + $0x5e8] ss:$28 sps:$4 sm:$0xff]  }
 0x375   :  { %2693 = vmatprep.subr.bf16.mxu0 %v3736_v17  ;;  %2779 = vmatprep.subr.bf16.mxu1 %v3739_v18  ;;  %v3793_v1 = vld [vmem:[#allocation7 + $0x5bc] ss:$28 sps:$4 sm:$0xff]   ;;  %v3799_v3 = vld [vmem:[#allocation7 + $0x5f4] ss:$28 sps:$4 sm:$0xff]   ;;  %v3802_v4 = vld [vmem:[#allocation7 + $0x624] ss:$28 sps:$4 sm:$0xff]  }
 0x376   :  { %v3791_v48 = vld [vmem:[#allocation7 + $0x5b8] ss:$28 sps:$4 sm:$0xff]   ;;  %v3797_v50 = vld [vmem:[#allocation7 + $0x5f0] ss:$28 sps:$4 sm:$0xff]   ;;  %v3800_v7 = vld [vmem:[#allocation7 + $0x620] ss:$28 sps:$4 sm:$0xff]  }
 0x377   :  { %2694 = vmatpush1.bf16.msra.mxu0 %v3734_v27  ;;  %2780 = vmatpush1.bf16.msra.mxu1 %v3737_v28  ;;  %v3805_v5 = vld [vmem:[#allocation7 + $0x62c] ss:$28 sps:$4 sm:$0xff]   ;;  %v3808_v11 = vld [vmem:[#allocation7 + $0x65c] ss:$28 sps:$4 sm:$0xff]   ;;  %v3811_v12 = vld [vmem:[#allocation7 + $0x664] ss:$28 sps:$4 sm:$0xff]  }
 0x378   :  { %2695 = vmatprep.subr.bf16.mxu0 %v3742_v33  ;;  %2781 = vmatprep.subr.bf16.mxu1 %v3745_v35  ;;  %v3803_v10 = vld [vmem:[#allocation7 + $0x628] ss:$28 sps:$4 sm:$0xff]   ;;  %v3806_v13 = vld [vmem:[#allocation7 + $0x658] ss:$28 sps:$4 sm:$0xff]   ;;  %v3809_v16 = vld [vmem:[#allocation7 + $0x660] ss:$28 sps:$4 sm:$0xff]  }
 0x379   :  { %v3814_v17 = vld [vmem:[#allocation7 + $0x694] ss:$28 sps:$4 sm:$0xff]   ;;  %v3817_v18 = vld [vmem:[#allocation7 + $0x69c] ss:$28 sps:$4 sm:$0xff]   ;;  %v3820_v27 = vld [vmem:[#allocation7 + $0x6cc] ss:$28 sps:$4 sm:$0xff]  }
 0x37a   :  { %v3812_v25 = vld [vmem:[#allocation7 + $0x690] ss:$28 sps:$4 sm:$0xff]   ;;  %v3815_v26 = vld [vmem:[#allocation7 + $0x698] ss:$28 sps:$4 sm:$0xff]   ;;  %v3818_v31 = vld [vmem:[#allocation7 + $0x6c8] ss:$28 sps:$4 sm:$0xff]  }
 0x37b   :  { %2696 = vmatpush1.bf16.msra.mxu0 %v3740_v37  ;;  %2782 = vmatpush1.bf16.msra.mxu1 %v3743_v38  ;;  %v3823_v28 = vld [vmem:[#allocation7 + $0x6d4] ss:$28 sps:$4 sm:$0xff]  }
 0x37c   :  { %2697 = vmatprep.subr.bf16.mxu0 %v3748_v39  ;;  %2783 = vmatprep.subr.bf16.mxu1 %v3751_v40  ;;  %v3821_v33 = vld [vmem:[#allocation7 + $0x6d0] ss:$28 sps:$4 sm:$0xff]   ;;  %v3827_v37 = vld [vmem:[#allocation7 + $0x1d8] ss:$28 sps:$4 sm:$0xff]  }
 0x37d   :  { %v3826_v35 = vld [vmem:[#allocation7 + $0x14] ss:$28 sps:$4 sm:$0xff]   ;;  %v3831_v40 = vld [vmem:[#allocation7 + $0x4c] ss:$28 sps:$4 sm:$0xff]  }
 0x37e   :  { %v3824_v38 = vld [vmem:[#allocation7 + $0x10] ss:$28 sps:$4 sm:$0xff]   ;;  %v3828_v39 = vld [vmem:[#allocation7 + $0x18] ss:$28 sps:$4 sm:$0xff]  }
 0x37f   :  { %2698 = vmatpush1.bf16.msra.mxu0 %v3746_v41  ;;  %2784 = vmatpush1.bf16.msra.mxu1 %v3749_v44  ;;  %v3832_v41 = vld [vmem:[#allocation7 + $0x210] ss:$28 sps:$4 sm:$0xff]   ;;  %v3829_v44 = vld [vmem:[#allocation7 + $0x48] ss:$28 sps:$4 sm:$0xff]  }
 0x380   :  { %2699 = vmatprep.subr.bf16.mxu0 %v3754_v42  ;;  %2785 = vmatprep.subr.bf16.mxu1 %v3757_v51  ;;  %v3833_v42 = vld [vmem:[#allocation7 + $0x50] ss:$28 sps:$4 sm:$0xff]   ;;  %v3836_v51 = vld [vmem:[#allocation7 + $0x84] ss:$28 sps:$4 sm:$0xff]  }
 0x383   :  { %2700 = vmatpush1.bf16.msra.mxu0 %v3752_v49  ;;  %2786 = vmatpush1.bf16.msra.mxu1 %v3755_v54  ;;  %v3837_v49 = vld [vmem:[#allocation7 + $0x248] ss:$28 sps:$4 sm:$0xff]   ;;  %v3834_v54 = vld [vmem:[#allocation7 + $0x80] ss:$28 sps:$4 sm:$0xff]  }
 0x384   :  { %2701 = vmatprep.subr.bf16.mxu0 %v3760_v55  ;;  %2787 = vmatprep.subr.bf16.mxu1 %v3763_v19  ;;  %v3838_v55 = vld [vmem:[#allocation7 + $0x88] ss:$28 sps:$4 sm:$0xff]   ;;  %v3841_v19 = vld [vmem:[#allocation7 + $0xbc] ss:$28 sps:$4 sm:$0xff]  }
 0x387   :  { %2702 = vmatpush1.bf16.msra.mxu0 %v3758_v23  ;;  %2788 = vmatpush1.bf16.msra.mxu1 %v3761_v52  ;;  %v3842_v23 = vld [vmem:[#allocation7 + $0x280] ss:$28 sps:$4 sm:$0xff]   ;;  %v3839_v52 = vld [vmem:[#allocation7 + $0xb8] ss:$28 sps:$4 sm:$0xff]  }
 0x388   :  { %2703 = vmatprep.subr.bf16.mxu0 %v3766_v56  ;;  %2789 = vmatprep.subr.bf16.mxu1 %v3769_v20  ;;  %v3843_v56 = vld [vmem:[#allocation7 + $0xc0] ss:$28 sps:$4 sm:$0xff]   ;;  %v3846_v20 = vld [vmem:[#allocation7 + $0xf4] ss:$28 sps:$4 sm:$0xff]  }
 0x38b   :  { %2704 = vmatpush1.bf16.msra.mxu0 %v3764_v24  ;;  %2790 = vmatpush1.bf16.msra.mxu1 %v3767_v0  ;;  %v3844_v24 = vld [vmem:[#allocation7 + $0xf0] ss:$28 sps:$4 sm:$0xff]   ;;  %v3848_v0 = vld [vmem:[#allocation7 + $0xf8] ss:$28 sps:$4 sm:$0xff]  }
 0x38c   :  { %2705 = vmatprep.subr.bf16.mxu0 %v3772_v57  ;;  %2791 = vmatprep.subr.bf16.mxu1 %v3775_v21  ;;  %v3851_v57 = vld [vmem:[#allocation7 + $0x12c] ss:$28 sps:$4 sm:$0xff]  }
 0x38d   :  { %v3852_v21 = vld [vmem:[#allocation7 + $0x2f0] ss:$28 sps:$4 sm:$0xff]  }
 0x38f   :  { %2706 = vmatpush1.bf16.msra.mxu0 %v3770_v29  ;;  %2792 = vmatpush1.bf16.msra.mxu1 %v3773_v22  ;;  %v3849_v29 = vld [vmem:[#allocation7 + $0x128] ss:$28 sps:$4 sm:$0xff]   ;;  %v3853_v22 = vld [vmem:[#allocation7 + $0x130] ss:$28 sps:$4 sm:$0xff]  }
 0x390   :  { %2707 = vmatprep.subr.bf16.mxu0 %v3778_v30  ;;  %2793 = vmatprep.subr.bf16.mxu1 %v3781_v46  ;;  %v3856_v30 = vld [vmem:[#allocation7 + $0x164] ss:$28 sps:$4 sm:$0xff]  }
 0x391   :  { %v3857_v46 = vld [vmem:[#allocation7 + $0x328] ss:$28 sps:$4 sm:$0xff]  }
 0x393   :  { %2708 = vmatpush1.bf16.msra.mxu0 %v3776_v58  ;;  %2794 = vmatpush1.bf16.msra.mxu1 %v3779_v59  ;;  %v3854_v58 = vld [vmem:[#allocation7 + $0x160] ss:$28 sps:$4 sm:$0xff]   ;;  %v3858_v59 = vld [vmem:[#allocation7 + $0x168] ss:$28 sps:$4 sm:$0xff]  }
 0x394   :  { %2709 = vmatprep.subr.bf16.mxu0 %v3784_v60  ;;  %2795 = vmatprep.subr.bf16.mxu1 %v3787_v61  ;;  %v3861_v60 = vld [vmem:[#allocation7 + $0x19c] ss:$28 sps:$4 sm:$0xff]  }
 0x395   :  { %v3862_v61 = vld [vmem:[#allocation7 + $0x360] ss:$28 sps:$4 sm:$0xff]  }
 0x397   :  { %2710 = vmatpush1.bf16.msra.mxu0 %v3782_v62  ;;  %2796 = vmatpush1.bf16.msra.mxu1 %v3785_v63  ;;  %v3859_v62 = vld [vmem:[#allocation7 + $0x198] ss:$28 sps:$4 sm:$0xff]   ;;  %v3863_v63 = vld [vmem:[#allocation7 + $0x1a0] ss:$28 sps:$4 sm:$0xff]  }
 0x398   :  { %2711 = vmatprep.subr.bf16.mxu0 %v3790_v45  ;;  %2797 = vmatprep.subr.bf16.mxu1 %v3793_v1  ;;  %v3866_v45 = vld [vmem:[#allocation7 + $0x1d4] ss:$28 sps:$4 sm:$0xff]  }
 0x399   :  { %v3867_v1 = vld [vmem:[#allocation7 + $0x558] ss:$28 sps:$4 sm:$0xff]  }
 0x39b   :  { %2712 = vmatpush1.bf16.msra.mxu0 %v3788_v53  ;;  %2798 = vmatpush1.bf16.msra.mxu1 %v3791_v48  ;;  %v3864_v53 = vld [vmem:[#allocation7 + $0x1d0] ss:$28 sps:$4 sm:$0xff]   ;;  %v3868_v48 = vld [vmem:[#allocation7 + $0x398] ss:$28 sps:$4 sm:$0xff]  }
 0x39c   :  { %2713 = vmatprep.subr.bf16.mxu0 %v3796_v2  ;;  %2799 = vmatprep.subr.bf16.mxu1 %v3799_v3  ;;  %v3871_v2 = vld [vmem:[#allocation7 + $0x20c] ss:$28 sps:$4 sm:$0xff]  }
 0x39d   :  { %v3872_v3 = vld [vmem:[#allocation7 + $0x590] ss:$28 sps:$4 sm:$0xff]  }
 0x39f   :  { %2714 = vmatpush1.bf16.msra.mxu0 %v3794_v47  ;;  %2800 = vmatpush1.bf16.msra.mxu1 %v3797_v50  ;;  %v3869_v47 = vld [vmem:[#allocation7 + $0x208] ss:$28 sps:$4 sm:$0xff]   ;;  %v3873_v50 = vld [vmem:[#allocation7 + $0x3d0] ss:$28 sps:$4 sm:$0xff]  }
 0x3a0   :  { %2715 = vmatprep.subr.bf16.mxu0 %v3802_v4  ;;  %2801 = vmatprep.subr.bf16.mxu1 %v3805_v5  ;;  %v3876_v4 = vld [vmem:[#allocation7 + $0x244] ss:$28 sps:$4 sm:$0xff]  }
 0x3a1   :  { %v3877_v5 = vld [vmem:[#allocation7 + $0x5c8] ss:$28 sps:$4 sm:$0xff]  }
 0x3a3   :  { %2716 = vmatpush1.bf16.msra.mxu0 %v3800_v7  ;;  %2802 = vmatpush1.bf16.msra.mxu1 %v3803_v10  ;;  %v3874_v7 = vld [vmem:[#allocation7 + $0x240] ss:$28 sps:$4 sm:$0xff]   ;;  %v3878_v10 = vld [vmem:[#allocation7 + $0x408] ss:$28 sps:$4 sm:$0xff]  }
 0x3a4   :  { %2717 = vmatprep.subr.bf16.mxu0 %v3808_v11  ;;  %2803 = vmatprep.subr.bf16.mxu1 %v3811_v12  ;;  %v3881_v11 = vld [vmem:[#allocation7 + $0x27c] ss:$28 sps:$4 sm:$0xff]  }
 0x3a5   :  { %v3882_v12 = vld [vmem:[#allocation7 + $0x600] ss:$28 sps:$4 sm:$0xff]  }
 0x3a7   :  { %2718 = vmatpush1.bf16.msra.mxu0 %v3806_v13  ;;  %2804 = vmatpush1.bf16.msra.mxu1 %v3809_v16  ;;  %v3879_v13 = vld [vmem:[#allocation7 + $0x278] ss:$28 sps:$4 sm:$0xff]   ;;  %v3883_v16 = vld [vmem:[#allocation7 + $0x440] ss:$28 sps:$4 sm:$0xff]  }
 0x3a8   :  { %2719 = vmatprep.subr.bf16.mxu0 %v3814_v17  ;;  %2805 = vmatprep.subr.bf16.mxu1 %v3817_v18  ;;  %v3886_v17 = vld [vmem:[#allocation7 + $0x2b4] ss:$28 sps:$4 sm:$0xff]  }
 0x3a9   :  { %v3887_v18 = vld [vmem:[#allocation7 + $0x638] ss:$28 sps:$4 sm:$0xff]  }
 0x3ab   :  { %2720 = vmatpush1.bf16.msra.mxu0 %v3812_v25  ;;  %2806 = vmatpush1.bf16.msra.mxu1 %v3815_v26  ;;  %v3884_v25 = vld [vmem:[#allocation7 + $0x2b0] ss:$28 sps:$4 sm:$0xff]   ;;  %v3888_v26 = vld [vmem:[#allocation7 + $0x478] ss:$28 sps:$4 sm:$0xff]  }
 0x3ac   :  { %2721 = vmatprep.subr.bf16.mxu0 %v3820_v27  ;;  %2807 = vmatprep.subr.bf16.mxu1 %v3823_v28  ;;  %v3891_v27 = vld [vmem:[#allocation7 + $0x2ec] ss:$28 sps:$4 sm:$0xff]  }
 0x3ad   :  { %v3892_v28 = vld [vmem:[#allocation7 + $0x670] ss:$28 sps:$4 sm:$0xff]  }
 0x3af   :  { %2722 = vmatpush1.bf16.msra.mxu0 %v3818_v31  ;;  %2808 = vmatpush1.bf16.msra.mxu1 %v3821_v33  ;;  %v3889_v31 = vld [vmem:[#allocation7 + $0x2e8] ss:$28 sps:$4 sm:$0xff]   ;;  %v3893_v33 = vld [vmem:[#allocation7 + $0x4b0] ss:$28 sps:$4 sm:$0xff]  }
 0x3b0   :  { %2820 = vmatprep.subr.bf16.mxu0 %v3826_v35  ;;  %3400 = vmatprep.subr.bf16.mxu1 %v3827_v37  ;;  %v3896_v35 = vld [vmem:[#allocation7 + $0x324] ss:$28 sps:$4 sm:$0xff]  }
 0x3b1   :  { %v3897_v37 = vld [vmem:[#allocation7 + $0x6a8] ss:$28 sps:$4 sm:$0xff]  }
 0x3b2   :  { %2724 = vmatmul.mubr.bf16.vlgmr.msra.gmra.mrb[4].mxu0 %v4363_v36  ;;  %2810 = vmatmul.mubr.bf16.vlgmr.msra.gmra.mrb[12].mxu1 %v4363_v36 }
 0x3b3   :  { %2821 = vmatpush1.bf16.msra.mxu0 %v3824_v38  ;;  %2852 = vmatprep.mubr.bf16.mxu0 %v4350_v6  ;;  %v3894_v38 = vld [vmem:[#allocation7 + $0x320] ss:$28 sps:$4 sm:$0xff]  }
 0x3b4   :  { %3401 = vmatpush3.bf16.msra.mxu1 %v3828_v39  ;;  %2938 = vmatprep.mubr.bf16.mxu1 %v4350_v6  ;;  %v3847_v6 = vld [vmem:[#allocation7 + $0x2b8] ss:$28 sps:$4 sm:$0xff]   ;;  %v3898_v39 = vld [vmem:[#allocation7 + $0x4e8] ss:$28 sps:$4 sm:$0xff]  }
 0x3b5   :  { %2822 = vmatprep.subr.bf16.mxu0 %v3831_v40  ;;  %3402 = vmatprep.subr.bf16.mxu1 %v3832_v41  ;;  %v3901_v40 = vld [vmem:[#allocation7 + $0x35c] ss:$28 sps:$4 sm:$0xff]  }
 0x3b6   :  { %v3902_v41 = vld [vmem:[#allocation7 + $0x6e0] ss:$28 sps:$4 sm:$0xff]  }
 0x3b7   :  { %2823 = vmatpush1.bf16.msra.mxu0 %v3829_v44  ;;  %v3899_v44 = vld [vmem:[#allocation7 + $0x358] ss:$28 sps:$4 sm:$0xff]  }
 0x3b8   :  { %3403 = vmatpush3.bf16.msra.mxu1 %v3833_v42  ;;  %2824 = vmatprep.subr.bf16.mxu0 %v3836_v51  ;;  %v3903_v42 = vld [vmem:[#allocation7 + $0x520] ss:$28 sps:$4 sm:$0xff]   ;;  %v3906_v51 = vld [vmem:[#allocation7 + $0x394] ss:$28 sps:$4 sm:$0xff]  }
 0x3b9   :  { %3404 = vmatprep.subr.bf16.mxu1 %v3837_v49  ;;  %v3904_v49 = vld [vmem:[#allocation7 + $0x390] ss:$28 sps:$4 sm:$0xff]  }
 0x3bb   :  { %2825 = vmatpush1.bf16.msra.mxu0 %v3834_v54  ;;  %v3909_v54 = vld [vmem:[#allocation7 + $0x3cc] ss:$28 sps:$4 sm:$0xff]  }
 0x3bc   :  { %3405 = vmatpush3.bf16.msra.mxu1 %v3838_v55  ;;  %2826 = vmatprep.subr.bf16.mxu0 %v3841_v19  ;;  %v3907_v55 = vld [vmem:[#allocation7 + $0x3c8] ss:$28 sps:$4 sm:$0xff]  }
 0x3bd   :  { %3406 = vmatprep.subr.bf16.mxu1 %v3842_v23  ;;  %v3912_v19 = vld [vmem:[#allocation7 + $0x404] ss:$28 sps:$4 sm:$0xff]  }
 0x3be   :  { %v3910_v23 = vld [vmem:[#allocation7 + $0x400] ss:$28 sps:$4 sm:$0xff]  }
 0x3bf   :  { %2827 = vmatpush1.bf16.msra.mxu0 %v3839_v52  ;;  %v3915_v52 = vld [vmem:[#allocation7 + $0x43c] ss:$28 sps:$4 sm:$0xff]  }
 0x3c0   :  { %3407 = vmatpush3.bf16.msra.mxu1 %v3843_v56  ;;  %2828 = vmatprep.subr.bf16.mxu0 %v3846_v20  ;;  %v3913_v56 = vld [vmem:[#allocation7 + $0x438] ss:$28 sps:$4 sm:$0xff]  }
 0x3c1   :  { %3408 = vmatprep.subr.bf16.mxu1 %v3847_v6  ;;  %v3918_v20 = vld [vmem:[#allocation7 + $0x474] ss:$28 sps:$4 sm:$0xff]  }
 0x3c2   :  { %v3916_v6 = vld [vmem:[#allocation7 + $0x470] ss:$28 sps:$4 sm:$0xff]  }
 0x3c3   :  { %2829 = vmatpush1.bf16.msra.mxu0 %v3844_v24  ;;  %v3919_v24 = vld [vmem:[#allocation7 + $0x4a8] ss:$28 sps:$4 sm:$0xff]  }
 0x3c4   :  { %3409 = vmatpush3.bf16.msra.mxu1 %v3848_v0  ;;  %2830 = vmatprep.subr.bf16.mxu0 %v3851_v57  ;;  %v3924_v0 = vld [vmem:[#allocation7 + $0x4e4] ss:$28 sps:$4 sm:$0xff]   ;;  %v3927_v57 = vld [vmem:[#allocation7 + $0x51c] ss:$28 sps:$4 sm:$0xff]  }
 0x3c5   :  { %3410 = vmatprep.subr.bf16.mxu1 %v3852_v21  ;;  %v3925_v21 = vld [vmem:[#allocation7 + $0x518] ss:$28 sps:$4 sm:$0xff]  }
 0x3c7   :  { %2831 = vmatpush1.bf16.msra.mxu0 %v3849_v29  ;;  %v3930_v29 = vld [vmem:[#allocation7 + $0x554] ss:$28 sps:$4 sm:$0xff]  }
 0x3c8   :  { %3411 = vmatpush3.bf16.msra.mxu1 %v3853_v22  ;;  %2832 = vmatprep.subr.bf16.mxu0 %v3856_v30  ;;  %v3928_v22 = vld [vmem:[#allocation7 + $0x550] ss:$28 sps:$4 sm:$0xff]  }
 0x3c9   :  { %3412 = vmatprep.subr.bf16.mxu1 %v3857_v46  ;;  %v3933_v30 = vld [vmem:[#allocation7 + $0x58c] ss:$28 sps:$4 sm:$0xff]  }
 0x3ca   :  { %v3931_v46 = vld [vmem:[#allocation7 + $0x588] ss:$28 sps:$4 sm:$0xff]  }
 0x3cb   :  { %2833 = vmatpush1.bf16.msra.mxu0 %v3854_v58  ;;  %v3936_v58 = vld [vmem:[#allocation7 + $0x5c4] ss:$28 sps:$4 sm:$0xff]  }
 0x3cc   :  { %3413 = vmatpush3.bf16.msra.mxu1 %v3858_v59  ;;  %2834 = vmatprep.subr.bf16.mxu0 %v3861_v60  ;;  %v3934_v59 = vld [vmem:[#allocation7 + $0x5c0] ss:$28 sps:$4 sm:$0xff]  }
 0x3cd   :  { %3414 = vmatprep.subr.bf16.mxu1 %v3862_v61  ;;  %v3939_v60 = vld [vmem:[#allocation7 + $0x5fc] ss:$28 sps:$4 sm:$0xff]  }
 0x3ce   :  { %v3937_v61 = vld [vmem:[#allocation7 + $0x5f8] ss:$28 sps:$4 sm:$0xff]  }
 0x3cf   :  { %2835 = vmatpush1.bf16.msra.mxu0 %v3859_v62  ;;  %v3942_v62 = vld [vmem:[#allocation7 + $0x634] ss:$28 sps:$4 sm:$0xff]  }
 0x3d0   :  { %3415 = vmatpush3.bf16.msra.mxu1 %v3863_v63  ;;  %2836 = vmatprep.subr.bf16.mxu0 %v3866_v45  ;;  %v3940_v63 = vld [vmem:[#allocation7 + $0x630] ss:$28 sps:$4 sm:$0xff]  }
 0x3d1   :  { %3422 = vmatprep.subr.bf16.mxu1 %v3867_v1  ;;  %v3945_v45 = vld [vmem:[#allocation7 + $0x66c] ss:$28 sps:$4 sm:$0xff]  }
 0x3d2   :  { %v3943_v1 = vld [vmem:[#allocation7 + $0x668] ss:$28 sps:$4 sm:$0xff]  }
 0x3d3   :  { %2939 = vmatmul.mubr.bf16.vlgmr.msra.gmra.mrb[16].mxu1 %v4352_v14  ;;  %2837 = vmatpush1.bf16.msra.mxu0 %v3864_v53  ;;  %v3948_v53 = vld [vmem:[#allocation7 + $0x6a4] ss:$28 sps:$4 sm:$0xff]  }
 0x3d4   :  { %3423 = vmatpush3.bf16.msra.mxu1 %v3868_v48  ;;  %2979 = vmatprep.mubr.bf16.mxu1 %v4354_v15  ;;  %v3946_v48 = vld [vmem:[#allocation7 + $0x6a0] ss:$28 sps:$4 sm:$0xff]  }
 0x3d5   :  { %2838 = vmatprep.subr.bf16.mxu0 %v3871_v2  ;;  %3424 = vmatprep.subr.bf16.mxu1 %v3872_v3  ;;  %v3951_v2 = vld [vmem:[#allocation7 + $0x6dc] ss:$28 sps:$4 sm:$0xff]  }
 0x3d6   :  { %v3949_v3 = vld [vmem:[#allocation7 + $0x6d8] ss:$28 sps:$4 sm:$0xff]  }
 0x3d7   :  { %2839 = vmatpush1.bf16.msra.mxu0 %v3869_v47  ;;  %v4378_v47 = vld [vmem:[%s4428_s10] sm:$0xff] }
 0x3d8   :  { %3425 = vmatpush3.bf16.msra.mxu1 %v3873_v50  ;;  %2840 = vmatprep.subr.bf16.mxu0 %v3876_v4  ;;  %v1464_v50 = vrot.slane %v4378_v47, %v4253_v32  ;;  %v1472_v4 = vrot.slane %v4378_v47, %v4319_v8 }
 0x3d9   :  { %3426 = vmatprep.subr.bf16.mxu1 %v3877_v5  ;;  %v1468_v5 = vrot.slane %v4378_v47, %v4259_v34 }
 0x3db   :  { %2841 = vmatpush1.bf16.msra.mxu0 %v3874_v7  ;;  %v1476_v7 = vrot.slane %v4378_v47, %v4322_v9 }
 0x3dc   :  { %3427 = vmatpush3.bf16.msra.mxu1 %v3878_v10  ;;  %2842 = vmatprep.subr.bf16.mxu0 %v3881_v11 }
 0x3dd   :  { %3428 = vmatprep.subr.bf16.mxu1 %v3882_v12 }
 0x3df   :  { %2843 = vmatpush1.bf16.msra.mxu0 %v3879_v13 }
 0x3e0   :  { %3429 = vmatpush3.bf16.msra.mxu1 %v3883_v16  ;;  %2844 = vmatprep.subr.bf16.mxu0 %v3886_v17 }
 0x3e1   :  { %3430 = vmatprep.subr.bf16.mxu1 %v3887_v18 }
 0x3e3   :  { %2845 = vmatpush1.bf16.msra.mxu0 %v3884_v25 }
 0x3e4   :  { %3431 = vmatpush3.bf16.msra.mxu1 %v3888_v26  ;;  %2846 = vmatprep.subr.bf16.mxu0 %v3891_v27 }
 0x3e5   :  { %3432 = vmatprep.subr.bf16.mxu1 %v3892_v28 }
 0x3e7   :  { %2847 = vmatpush1.bf16.msra.mxu0 %v3889_v31 }
 0x3e8   :  { %3433 = vmatpush3.bf16.msra.mxu1 %v3893_v33  ;;  %2848 = vmatprep.subr.bf16.mxu0 %v3896_v35 }
 0x3e9   :  { %3434 = vmatprep.subr.bf16.mxu1 %v3897_v37 }
 0x3eb   :  { %2849 = vmatpush1.bf16.msra.mxu0 %v3894_v38 }
 0x3ec   :  { %3435 = vmatpush3.bf16.msra.mxu1 %v3898_v39  ;;  %2850 = vmatprep.subr.bf16.mxu0 %v3901_v40 }
 0x3ed   :  { %3436 = vmatprep.subr.bf16.mxu1 %v3902_v41 }
 0x3ef   :  { %2851 = vmatpush1.bf16.msra.mxu0 %v3899_v44 }
 0x3f0   :  { %3437 = vmatpush3.bf16.msra.mxu1 %v3903_v42  ;;  %2863 = vmatprep.subr.bf16.mxu0 %v3906_v51 }
 0x3f2   :  { %2853 = vmatmul.mubr.bf16.vlgmr.msra.gmra.mrb[8].mxu0 %v4352_v14  ;;  %v3921_v14 = vld [vmem:[#allocation7 + $0x4ac] ss:$28 sps:$4 sm:$0xff]  }
 0x3f3   :  { %2980 = vmatmul.mubr.bf16.vlgmr.msra.gmra.mrb[20].mxu1 %v4363_v36  ;;  %2864 = vmatpush1.bf16.msra.mxu0 %v3904_v49 }
 0x3f4   :  { %2895 = vmatprep.mubr.bf16.mxu0 %v4354_v15  ;;  %2865 = vmatprep.subr.bf16.mxu0 %v3909_v54  ;;  %v3922_v15 = vld [vmem:[#allocation7 + $0x4e0] ss:$28 sps:$4 sm:$0xff]  }
 0x3f7   :  { %2866 = vmatpush1.bf16.msra.mxu0 %v3907_v55 }
 0x3f8   :  { %2867 = vmatprep.subr.bf16.mxu0 %v3912_v19 }
 0x3fb   :  { %2868 = vmatpush1.bf16.msra.mxu0 %v3910_v23 }
 0x3fc   :  { %2869 = vmatprep.subr.bf16.mxu0 %v3915_v52 }
 0x3ff   :  { %2870 = vmatpush1.bf16.msra.mxu0 %v3913_v56 }
 0x400   :  { %2871 = vmatprep.subr.bf16.mxu0 %v3918_v20  ;;  %v1487_v20 = vsub.s32 6, %v4228_v43 }
 0x403   :  { %2872 = vmatpush1.bf16.msra.mxu0 %v3916_v6  ;;  %v1488_v6 = vrot.slane %v4378_v47, %v1487_v20 }
 0x404   :  { %2873 = vmatprep.subr.bf16.mxu0 %v3921_v14 }
 0x407   :  { %2874 = vmatpush1.bf16.msra.mxu0 %v3919_v24 }
 0x408   :  { %2875 = vmatprep.subr.bf16.mxu0 %v3924_v0 }
 0x40b   :  { %2876 = vmatpush1.bf16.msra.mxu0 %v3922_v15 }
 0x40c   :  { %2877 = vmatprep.subr.bf16.mxu0 %v3927_v57 }
 0x40f   :  { %2878 = vmatpush1.bf16.msra.mxu0 %v3925_v21 }
 0x410   :  { %2879 = vmatprep.subr.bf16.mxu0 %v3930_v29 }
 0x413   :  { %2880 = vmatpush1.bf16.msra.mxu0 %v3928_v22 }
 0x414   :  { %2881 = vmatprep.subr.bf16.mxu0 %v3933_v30 }
 0x417   :  { %2882 = vmatpush1.bf16.msra.mxu0 %v3931_v46 }
 0x418   :  { %2883 = vmatprep.subr.bf16.mxu0 %v3936_v58 }
 0x41b   :  { %2884 = vmatpush1.bf16.msra.mxu0 %v3934_v59 }
 0x41c   :  { %2885 = vmatprep.subr.bf16.mxu0 %v3939_v60 }
 0x41f   :  { %2886 = vmatpush1.bf16.msra.mxu0 %v3937_v61 }
 0x420   :  { %2887 = vmatprep.subr.bf16.mxu0 %v3942_v62  ;;  %v1479_v62 = vsub.s32 4, %v4228_v43 }
 0x423   :  { %2888 = vmatpush1.bf16.msra.mxu0 %v3940_v63  ;;  %v1483_v63 = vsub.s32 5, %v4228_v43 }
 0x424   :  { %2889 = vmatprep.subr.bf16.mxu0 %v3945_v45  ;;  %v1480_v45 = vrot.slane %v4378_v47, %v1479_v62 }
 0x427   :  { %2890 = vmatpush1.bf16.msra.mxu0 %v3943_v1  ;;  %v1484_v1 = vrot.slane %v4378_v47, %v1483_v63 }
 0x428   :  { %2891 = vmatprep.subr.bf16.mxu0 %v3948_v53 }
 0x42b   :  { %2892 = vmatpush1.bf16.msra.mxu0 %v3946_v48 }
 0x42c   :  { %2893 = vmatprep.subr.bf16.mxu0 %v3951_v2 }
 0x42f   :  { %2894 = vmatpush1.bf16.msra.mxu0 %v3949_v3 }
 0x432   :  { %2896 = vmatmul.mubr.bf16.vlgmr.msra.gmra.mrb[8].mxu0 %v4363_v36 }
 0x485   :  { %v2725_v10 = vpop.f32.mrb[4].mxu0  ;;  %v2811_v11 = vpop.f32.mrb[12].mxu1 }
 0x486   :  { %v3464_v36 = vadd.f32 %v2725_v10, %v1464_v50  ;;  %v3468_v12 = vadd.f32 %v2811_v11, %v1472_v4  ;;  %v2727_v13 = vpop.f32.mrb[5].mxu0  ;;  %v2813_v16 = vpop.f32.mrb[13].mxu1 }
 0x487   :  { %v3465_v17 = vadd.f32 %v2727_v13, %v1468_v5  ;;  %v3469_v18 = vadd.f32 %v2813_v16, %v1476_v7  ;;  %v2729_v25 = vpop.f32.mrb[6].mxu0  ;;  %v2815_v26 = vpop.f32.mrb[14].mxu1 }
 0x488   :  { %3964 = vtanh.f32 %v3464_v36  ;;  %v3466_v32 = vadd.f32 %v2729_v25, %v1464_v50  ;;  %v2731_v27 = vpop.f32.mrb[7].mxu0  ;;  %v2817_v8 = vpop.f32.mrb[15].mxu1  ;;  %v3470_v28 = vadd.f32 %v2815_v26, %v1472_v4 }
 0x489   :  { %3966 = vtanh.f32 %v3468_v12  ;;  %v3467_v34 = vadd.f32 %v2731_v27, %v1468_v5  ;;  %v3471_v9 = vadd.f32 %v2817_v8, %v1476_v7 }
 0x48a   :  { %3968 = vtanh.f32 %v3465_v17 }
 0x48b   :  { %3970 = vtanh.f32 %v3469_v18 }
 0x48c   :  { %3972 = vtanh.f32 %v3466_v32 }
 0x48d   :  { %3974 = vtanh.f32 %v3470_v28 }
 0x48e   :  { %3976 = vtanh.f32 %v3467_v34 }
 0x48f   :  { %3978 = vtanh.f32 %v3471_v9 }
 0x492   :  { %v3965_v31 = vpop.eup %3964 }
 0x493   :  { %v3967_v33 = vpop.eup %3966 }
 0x494   :  { %v3969_v35 = vpop.eup %3968 }
 0x495   :  { %v3971_v37 = vpop.eup %3970  ;;  %v3383_v38 = vpack.c.bf16 %v3969_v35, %v3965_v31 }
 0x496   :  { %v3973_v39 = vpop.eup %3972  ;;  %v3384_v40 = vpack.c.bf16 %v3971_v37, %v3967_v33 }
 0x497   :  { %v3975_v41 = vpop.eup %3974  ;;  %3046 = vst [vmem:[%s4429_s11] sm:$0xff] %v3383_v38 }
 0x498   :  { %v3977_v44 = vpop.eup %3976  ;;  %3047 = vst [vmem:[%s4429_s11 + $0x8] sm:$0xff] %v3384_v40 }
 0x499   :  { %v3979_v42 = vpop.eup %3978  ;;  %v3387_v51 = vpack.c.bf16 %v3977_v44, %v3973_v39 }
 0x49a   :  { %v3388_v49 = vpack.c.bf16 %v3979_v42, %v3975_v41 }
 0x49b   :  { %3050 = vst [vmem:[%s4429_s11 + $0x1c] sm:$0xff] %v3387_v51 }
 0x49c   :  { %3051 = vst [vmem:[%s4429_s11 + $0x24] sm:$0xff] %v3388_v49 }
 0x4a6   :  { %v3416_v54 = vpop.f32.mrb[16].mxu1 }
 0x4a7   :  { %v3417_v55 = vpop.f32.mrb[17].mxu1 }
 0x4a8   :  { %v3418_v19 = vadd.f32 %v3417_v55, %v3416_v54  ;;  %v3419_v23 = vpop.f32.mrb[18].mxu1 }
 0x4a9   :  { %v3420_v52 = vpop.f32.mrb[19].mxu1 }
 0x4aa   :  { %v3421_v56 = vadd.f32 %v3420_v52, %v3419_v23  ;;  %v2941_v0 = vadd.f32 %v3418_v19, %v1488_v6 }
 0x4ac   :  { %v2944_v29 = vadd.f32 %v3421_v56, %v1488_v6 }
 0x4c6   :  { %v3438_v14 = vpop.f32.mrb[20].mxu1 }
 0x4c7   :  { %v3439_v24 = vpop.f32.mrb[21].mxu1 }
 0x4c8   :  { %v3440_v15 = vadd.f32 %v3439_v24, %v3438_v14  ;;  %v3441_v57 = vpop.f32.mrb[22].mxu1 }
 0x4c9   :  { %v3442_v21 = vpop.f32.mrb[23].mxu1 }
 0x4ca   :  { %v2982_v22 = vadd.f32 %v3440_v15, %v2941_v0  ;;  %v3443_v30 = vadd.f32 %v3442_v21, %v3441_v57 }
 0x4cc   :  { %3980 = vtanh.f32 %v2982_v22  ;;  %v2985_v46 = vadd.f32 %v3443_v30, %v2944_v29 }
 0x4ce   :  { %3982 = vtanh.f32 %v2985_v46 }
 0x4d6   :  { %v3981_v58 = vpop.eup %3980 }
 0x4d7   :  { %v3386_v59 = vpack.c.bf16 %v3981_v58, %v3981_v58 }
 0x4d8   :  { %v3983_v60 = vpop.eup %3982 }
 0x4d9   :  { %3049 = vst [vmem:[%s4429_s11 + $0x18] sm:$0xf] %v3386_v59  ;;  %v3390_v61 = vpack.c.bf16 %v3983_v60, %v3983_v60 }
 0x4db   :  { %3053 = vst [vmem:[%s4429_s11 + $0x34] sm:$0xf] %v3390_v61 }
 0x505   :  { %v2897_v53 = vpop.f32.mrb[8].mxu0 }
 0x506   :  { %v3472_v48 = vadd.f32 %v2897_v53, %v1480_v45  ;;  %v2899_v2 = vpop.f32.mrb[9].mxu0 }
 0x507   :  { %v3473_v3 = vadd.f32 %v2899_v2, %v1484_v1  ;;  %v2901_v50 = vpop.f32.mrb[10].mxu0 }
 0x508   :  { %3984 = vtanh.f32 %v3472_v48  ;;  %v3474_v4 = vadd.f32 %v2901_v50, %v1480_v45  ;;  %v2903_v5 = vpop.f32.mrb[11].mxu0 }
 0x509   :  { %3986 = vtanh.f32 %v3473_v3  ;;  %v3475_v7 = vadd.f32 %v2903_v5, %v1484_v1 }
 0x50a   :  { %3988 = vtanh.f32 %v3474_v4 }
 0x50b   :  { %3990 = vtanh.f32 %v3475_v7 }
 0x512   :  { %v3985_v10 = vpop.eup %3984 }
 0x513   :  { %v3987_v11 = vpop.eup %3986 }
 0x514   :  { %v3989_v36 = vpop.eup %3988  ;;  %v3385_v43 = vpack.c.bf16 %v3987_v11, %v3985_v10 }
 0x515   :  { %v3991_v12 = vpop.eup %3990 }
 0x516   :  { %3048 = vst [vmem:[%s4429_s11 + $0x10] sm:$0xff] %v3385_v43  ;;  %v3389_v47 = vpack.c.bf16 %v3991_v12, %v3989_v36 }
 0x518   :  { %3052 = vst [vmem:[%s4429_s11 + $0x2c] sm:$0xff] %v3389_v47 }
 0x519   :  { %3058 = vsyncpa [#allocation3], 1 }
 0x51a   :  { %3059 = vsyncpa [#allocation5], 1 }
 0x51b   :  { %3060 = vsyncpa [#allocation8], 1 }

</bundles_post_ra>
